<compile_context>
chip_gen: v5e
topology: v5e:2x2
jax: 0.10.0
libtpu: 0.0.40
codegen_flags: <defaults>
</compile_context>

<pallas_src>
import functools

import jax
import jax.numpy as jnp
import numpy as np
from jax.experimental import pallas as pl
from jax.experimental.pallas import tpu as pltpu


# conv tower configuration: (Cin, Cout, H_in, W_in); kernel 3, stride 2, pad 1
_CONV_CFG = ((1, 4, 48, 40), (4, 8, 24, 20), (8, 16, 12, 10))
_EPS = 1e-5


# ------------------------------ Pallas kernel ---------------------------------
def _net_kernel(a0_ref,
                s1_ref, m1_ref, b1_ref,
                s2_ref, m2_ref, b2_ref,
                s3_ref, m3_ref, b3_ref,
                sf_ref, w1h_ref, fb1_ref, w2_ref, fb2_ref, w3_ref, fb3_ref,
                out_ref):
    """Whole forward pass.  Activation layout: rows = (n, h), lanes = (c, w)."""

    def conv_block(act, s_ref, m_ref, b_ref):
        # For each kernel-row tap ki:
        #   rows    = SelH_ki @ act   (one-hot row gather == stride-2 H-direction im2col)
        #   contrib = rows  @ M_ki    (W-direction im2col + conv weight + BN scale, pre-folded)
        acc = None
        for ki in range(s_ref.shape[0]):
            rows = jnp.dot(s_ref[ki], act, preferred_element_type=jnp.float32)
            contrib = jnp.dot(rows, m_ref[ki], preferred_element_type=jnp.float32)
            acc = contrib if acc is None else acc + contrib
        return jnp.maximum(acc + b_ref[...], 0.0)          # (N*OH, Cout*OW)

    act = a0_ref[...]                                      # (N*48, 1*40)
    act = conv_block(act, s1_ref, m1_ref, b1_ref)          # (N*24, 4*20) = (48, 80)
    act = conv_block(act, s2_ref, m2_ref, b2_ref)          # (N*12, 8*10) = (24, 80)
    act = conv_block(act, s3_ref, m3_ref, b3_ref)          # (N*6, 16*5)  = (12, 80)

    # fc1 with the NCHW flatten permutation folded into per-h weight slabs:
    #   fc1[n] = sum_h act[n*6 + h, :] @ W1h[h]
    acc = None
    for h in range(w1h_ref.shape[0]):
        rows = jnp.dot(sf_ref[h], act, preferred_element_type=jnp.float32)    # (N, 80)
        t = jnp.dot(rows, w1h_ref[h], preferred_element_type=jnp.float32)     # (N, 250)
        acc = t if acc is None else acc + t
    x = acc + fb1_ref[...]                                                          # (N, 250)
    x = jnp.dot(x, w2_ref[...], preferred_element_type=jnp.float32) + fb2_ref[...]  # (N, 120)
    x = jnp.dot(x, w3_ref[...], preferred_element_type=jnp.float32) + fb3_ref[...]  # (N, 6)
    out_ref[...] = x


# ------------------------- host-side weight folding ----------------------------
def _selh(n_batch, h_in, ki):
    """One-hot (N*OH, N*H): output row (n, oh) selects padded input row 2*oh + ki - 1."""
    oh = h_in // 2
    s = np.zeros((n_batch * oh, n_batch * h_in), np.float32)
    for n in range(n_batch):
        for o in range(oh):
            h = 2 * o + ki - 1
            if 0 <= h < h_in:                 # rows falling in zero-padding stay all-zero
                s[n * oh + o, n * h_in + h] = 1.0
    return s


def _selw(w_in, kj):
    """One-hot (W, OW): column ow reads padded input column 2*ow + kj - 1."""
    ow = w_in // 2
    s = np.zeros((w_in, ow), np.float32)
    for o in range(ow):
        w = 2 * o + kj - 1
        if 0 <= w < w_in:
            s[w, o] = 1.0
    return s


def prepare_operands(params, n_batch):
    """One-time folding of all weights / BN stats into the kernel operand list."""
    ops = []
    for i, (cin, cout, h_in, w_in) in enumerate(_CONV_CFG, start=1):
        w = params[f"conv{i}_w"]                              # (Cout, Cin, 3, 3)
        b = params[f"conv{i}_b"]
        scale = params[f"bn{i}_gamma"] / jnp.sqrt(params[f"bn{i}_var"] + _EPS)
        bias = params[f"bn{i}_beta"] - params[f"bn{i}_mean"] * scale + b * scale
        wf = w * scale[:, None, None, None]                   # BN scale folded into conv weight
        ow = w_in // 2
        sel = jnp.asarray(np.stack([_selh(n_batch, h_in, ki) for ki in range(3)]))
        taps = []
        for ki in range(3):
            m = None
            for kj in range(3):
                sw = jnp.asarray(_selw(w_in, kj))             # (W, OW) one-hot
                # M_ki[(ci, wi), (co, ow)] += wf[co, ci, ki, kj] * [wi == 2*ow + kj - 1]
                contrib = jnp.einsum("oc,wv->cwov", wf[:, :, ki, kj], sw)
                m = contrib if m is None else m + contrib
            taps.append(m.reshape(cin * w_in, cout * ow))
        ops += [sel,                                          # (3, N*OH, N*H)
                jnp.stack(taps),                              # (3, Cin*W, Cout*OW)
                jnp.repeat(bias, ow).reshape(1, cout * ow)]   # (1, Cout*OW)

    # fc1: fold the NCHW flatten (index c*30 + h*5 + w) into per-h weight slabs (h, c*w, out).
    c3, h3, w3 = 16, 6, 5
    w1 = params["fc1_w"].reshape(250, c3, h3, w3).transpose(2, 1, 3, 0).reshape(h3, c3 * w3, 250)
    sf = np.zeros((h3, n_batch, n_batch * h3), np.float32)    # batch-row gather, one-hot per h
    for h in range(h3):
        for n in range(n_batch):
            sf[h, n, n * h3 + h] = 1.0
    ops += [jnp.asarray(sf), w1, params["fc1_b"].reshape(1, 250),
            params["fc2_w"].T, params["fc2_b"].reshape(1, 120),
            params["fc3_w"].T, params["fc3_b"].reshape(1, 6)]
    return ops


# ------------------------------ forward ---------------------------------------
def net_forward(operands, x):
    n, c, h, w = x.shape
    a0 = x.transpose(0, 2, 1, 3).reshape(n * h, c * w)        # rows=(n,h), lanes=(c,w)
    vmem = pl.BlockSpec(memory_space=pltpu.MemorySpace.VMEM)
    return pl.pallas_call(
        _net_kernel,
        out_shape=jax.ShapeDtypeStruct((n, 6), jnp.float32),
        in_specs=[vmem] * (1 + len(operands)),
        out_specs=vmem,
    )(a0, *operands)


# ------------------------------ parameters ------------------------------------
def init_params(key):
    ks = jax.random.split(key, 18)
    p = {}
    for i, (cin, cout) in enumerate([(1, 4), (4, 8), (8, 16)]):
        p[f"conv{i+1}_w"] = 0.1 * jax.random.normal(ks[4 * i + 0], (cout, cin, 3, 3), jnp.float32)
        p[f"conv{i+1}_b"] = 0.05 * jax.random.normal(ks[4 * i + 1], (cout,), jnp.float32)
        p[f"bn{i+1}_gamma"] = 1.0 + 0.1 * jax.random.normal(ks[4 * i + 2], (cout,), jnp.float32)
        p[f"bn{i+1}_beta"] = 0.05 * jax.random.normal(ks[4 * i + 3], (cout,), jnp.float32)
        p[f"bn{i+1}_mean"] = jnp.zeros((cout,), jnp.float32) + 0.01 * i
        p[f"bn{i+1}_var"] = jnp.ones((cout,), jnp.float32)
    dims = [(480, 250), (250, 120), (120, 6)]
    for i, (din, dout) in enumerate(dims):
        p[f"fc{i+1}_w"] = 0.05 * jax.random.normal(ks[12 + 2 * i], (dout, din), jnp.float32)
        p[f"fc{i+1}_b"] = 0.01 * jax.random.normal(ks[13 + 2 * i], (dout,), jnp.float32)
    return p


# ------------------------------ reference (pure JAX) ---------------------------
def net_reference(params, x, eps=_EPS):
    p = params
    for i in range(1, 4):
        x = jax.lax.conv_general_dilated(
            x, p[f"conv{i}_w"], window_strides=(2, 2), padding=[(1, 1), (1, 1)],
            dimension_numbers=("NCHW", "OIHW", "NCHW"))
        x = x + p[f"conv{i}_b"][None, :, None, None]
        scale = p[f"bn{i}_gamma"] / jnp.sqrt(p[f"bn{i}_var"] + eps)
        x = (x - p[f"bn{i}_mean"][None, :, None, None]) * scale[None, :, None, None] \
            + p[f"bn{i}_beta"][None, :, None, None]
        x = jnp.maximum(x, 0.0)
    x = x.reshape(x.shape[0], -1)
    for i in range(1, 4):
        x = x @ p[f"fc{i}_w"].T + p[f"fc{i}_b"]
    return x


if __name__ == "__main__":
    key = jax.random.PRNGKey(0)
    pkey, xkey = jax.random.split(key)
    params = init_params(pkey)

    # Input sized so three stride-2 convs give 16 * 6 * 5 = 480 features (what fc1 expects).
    x = jax.random.normal(xkey, (2, 1, 48, 40), jnp.float32)

    operands = prepare_operands(params, n_batch=x.shape[0])   # one-time weight folding
    fwd = jax.jit(net_forward)
    out = jax.block_until_ready(fwd(operands, x))
    assert out.shape == (2, 6), out.shape

    ref = jax.block_until_ready(net_reference(params, x))
    np.testing.assert_allclose(np.asarray(out), np.asarray(ref), rtol=1e-3, atol=1e-3)

    print("KERNEL_OK")
</pallas_src>

<mosaic_0001>
module attributes {stable_mosaic.version = 11 : i64} {
  func.func @_net_kernel(%arg0: memref<96x40xf32, #tpu.memory_space<vmem>>, %arg1: memref<3x48x96xf32, #tpu.memory_space<vmem>>, %arg2: memref<3x40x80xf32, #tpu.memory_space<vmem>>, %arg3: memref<1x80xf32, #tpu.memory_space<vmem>>, %arg4: memref<3x24x48xf32, #tpu.memory_space<vmem>>, %arg5: memref<3x80x80xf32, #tpu.memory_space<vmem>>, %arg6: memref<1x80xf32, #tpu.memory_space<vmem>>, %arg7: memref<3x12x24xf32, #tpu.memory_space<vmem>>, %arg8: memref<3x80x80xf32, #tpu.memory_space<vmem>>, %arg9: memref<1x80xf32, #tpu.memory_space<vmem>>, %arg10: memref<6x2x12xf32, #tpu.memory_space<vmem>>, %arg11: memref<6x80x250xf32, #tpu.memory_space<vmem>>, %arg12: memref<1x250xf32, #tpu.memory_space<vmem>>, %arg13: memref<250x120xf32, #tpu.memory_space<vmem>>, %arg14: memref<1x120xf32, #tpu.memory_space<vmem>>, %arg15: memref<120x6xf32, #tpu.memory_space<vmem>>, %arg16: memref<1x6xf32, #tpu.memory_space<vmem>>, %arg17: memref<2x6xf32, #tpu.memory_space<vmem>>) attributes {dimension_semantics = [], scalar_prefetch = 0 : i64, scratch_operands = 0 : i64, tpu.core_type = #tpu.core_type<tc>} {
    %c0 = arith.constant 0 : index
    %c0_0 = arith.constant 0 : index
    %0 = vector.load %arg0[%c0, %c0_0] : memref<96x40xf32, #tpu.memory_space<vmem>>, vector<96x40xf32>
    %c0_1 = arith.constant 0 : index
    %c0_2 = arith.constant 0 : index
    %c0_3 = arith.constant 0 : index
    %1 = vector.load %arg1[%c0_1, %c0_2, %c0_3] : memref<3x48x96xf32, #tpu.memory_space<vmem>>, vector<1x48x96xf32>
    %2 = vector.shape_cast %1 : vector<1x48x96xf32> to vector<48x96xf32>
    %cst = arith.constant dense<0.000000e+00> : vector<48x40xf32>
    %3 = tpu.matmul %2, %0, %cst {dimension_numbers = #tpu.dot_dimension_numbers<[1], [0], [0], [1], [0, 0, 1, 1], [], []>} : vector<48x96xf32>, vector<96x40xf32>, vector<48x40xf32> -> vector<48x40xf32>
    %c0_4 = arith.constant 0 : index
    %c0_5 = arith.constant 0 : index
    %c0_6 = arith.constant 0 : index
    %4 = vector.load %arg2[%c0_4, %c0_5, %c0_6] : memref<3x40x80xf32, #tpu.memory_space<vmem>>, vector<1x40x80xf32>
    %5 = vector.shape_cast %4 : vector<1x40x80xf32> to vector<40x80xf32>
    %cst_7 = arith.constant dense<0.000000e+00> : vector<48x80xf32>
    %6 = tpu.matmul %3, %5, %cst_7 {dimension_numbers = #tpu.dot_dimension_numbers<[1], [0], [0], [1], [0, 0, 1, 1], [], []>} : vector<48x40xf32>, vector<40x80xf32>, vector<48x80xf32> -> vector<48x80xf32>
    %c1 = arith.constant 1 : index
    %c0_8 = arith.constant 0 : index
    %c0_9 = arith.constant 0 : index
    %7 = vector.load %arg1[%c1, %c0_8, %c0_9] : memref<3x48x96xf32, #tpu.memory_space<vmem>>, vector<1x48x96xf32>
    %8 = vector.shape_cast %7 : vector<1x48x96xf32> to vector<48x96xf32>
    %cst_10 = arith.constant dense<0.000000e+00> : vector<48x40xf32>
    %9 = tpu.matmul %8, %0, %cst_10 {dimension_numbers = #tpu.dot_dimension_numbers<[1], [0], [0], [1], [0, 0, 1, 1], [], []>} : vector<48x96xf32>, vector<96x40xf32>, vector<48x40xf32> -> vector<48x40xf32>
    %c1_11 = arith.constant 1 : index
    %c0_12 = arith.constant 0 : index
    %c0_13 = arith.constant 0 : index
    %10 = vector.load %arg2[%c1_11, %c0_12, %c0_13] : memref<3x40x80xf32, #tpu.memory_space<vmem>>, vector<1x40x80xf32>
    %11 = vector.shape_cast %10 : vector<1x40x80xf32> to vector<40x80xf32>
    %cst_14 = arith.constant dense<0.000000e+00> : vector<48x80xf32>
    %12 = tpu.matmul %9, %11, %cst_14 {dimension_numbers = #tpu.dot_dimension_numbers<[1], [0], [0], [1], [0, 0, 1, 1], [], []>} : vector<48x40xf32>, vector<40x80xf32>, vector<48x80xf32> -> vector<48x80xf32>
    %13 = arith.addf %6, %12 : vector<48x80xf32>
    %c2 = arith.constant 2 : index
    %c0_15 = arith.constant 0 : index
    %c0_16 = arith.constant 0 : index
    %14 = vector.load %arg1[%c2, %c0_15, %c0_16] : memref<3x48x96xf32, #tpu.memory_space<vmem>>, vector<1x48x96xf32>
    %15 = vector.shape_cast %14 : vector<1x48x96xf32> to vector<48x96xf32>
    %cst_17 = arith.constant dense<0.000000e+00> : vector<48x40xf32>
    %16 = tpu.matmul %15, %0, %cst_17 {dimension_numbers = #tpu.dot_dimension_numbers<[1], [0], [0], [1], [0, 0, 1, 1], [], []>} : vector<48x96xf32>, vector<96x40xf32>, vector<48x40xf32> -> vector<48x40xf32>
    %c2_18 = arith.constant 2 : index
    %c0_19 = arith.constant 0 : index
    %c0_20 = arith.constant 0 : index
    %17 = vector.load %arg2[%c2_18, %c0_19, %c0_20] : memref<3x40x80xf32, #tpu.memory_space<vmem>>, vector<1x40x80xf32>
    %18 = vector.shape_cast %17 : vector<1x40x80xf32> to vector<40x80xf32>
    %cst_21 = arith.constant dense<0.000000e+00> : vector<48x80xf32>
    %19 = tpu.matmul %16, %18, %cst_21 {dimension_numbers = #tpu.dot_dimension_numbers<[1], [0], [0], [1], [0, 0, 1, 1], [], []>} : vector<48x40xf32>, vector<40x80xf32>, vector<48x80xf32> -> vector<48x80xf32>
    %20 = arith.addf %13, %19 : vector<48x80xf32>
    %c0_22 = arith.constant 0 : index
    %c0_23 = arith.constant 0 : index
    %21 = vector.load %arg3[%c0_22, %c0_23] : memref<1x80xf32, #tpu.memory_space<vmem>>, vector<1x80xf32>
    %22 = vector.broadcast %21 : vector<1x80xf32> to vector<48x80xf32>
    %23 = arith.addf %20, %22 : vector<48x80xf32>
    %cst_24 = arith.constant 0.000000e+00 : f32
    %24 = vector.broadcast %cst_24 : f32 to vector<48x80xf32>
    %25 = arith.maximumf %23, %24 : vector<48x80xf32>
    %c0_25 = arith.constant 0 : index
    %c0_26 = arith.constant 0 : index
    %c0_27 = arith.constant 0 : index
    %26 = vector.load %arg4[%c0_25, %c0_26, %c0_27] : memref<3x24x48xf32, #tpu.memory_space<vmem>>, vector<1x24x48xf32>
    %27 = vector.shape_cast %26 : vector<1x24x48xf32> to vector<24x48xf32>
    %cst_28 = arith.constant dense<0.000000e+00> : vector<24x80xf32>
    %28 = tpu.matmul %27, %25, %cst_28 {dimension_numbers = #tpu.dot_dimension_numbers<[1], [0], [0], [1], [0, 0, 1, 1], [], []>} : vector<24x48xf32>, vector<48x80xf32>, vector<24x80xf32> -> vector<24x80xf32>
    %c0_29 = arith.constant 0 : index
    %c0_30 = arith.constant 0 : index
    %c0_31 = arith.constant 0 : index
    %29 = vector.load %arg5[%c0_29, %c0_30, %c0_31] : memref<3x80x80xf32, #tpu.memory_space<vmem>>, vector<1x80x80xf32>
    %30 = vector.shape_cast %29 : vector<1x80x80xf32> to vector<80x80xf32>
    %cst_32 = arith.constant dense<0.000000e+00> : vector<24x80xf32>
    %31 = tpu.matmul %28, %30, %cst_32 {dimension_numbers = #tpu.dot_dimension_numbers<[1], [0], [0], [1], [0, 0, 1, 1], [], []>} : vector<24x80xf32>, vector<80x80xf32>, vector<24x80xf32> -> vector<24x80xf32>
    %c1_33 = arith.constant 1 : index
    %c0_34 = arith.constant 0 : index
    %c0_35 = arith.constant 0 : index
    %32 = vector.load %arg4[%c1_33, %c0_34, %c0_35] : memref<3x24x48xf32, #tpu.memory_space<vmem>>, vector<1x24x48xf32>
    %33 = vector.shape_cast %32 : vector<1x24x48xf32> to vector<24x48xf32>
    %cst_36 = arith.constant dense<0.000000e+00> : vector<24x80xf32>
    %34 = tpu.matmul %33, %25, %cst_36 {dimension_numbers = #tpu.dot_dimension_numbers<[1], [0], [0], [1], [0, 0, 1, 1], [], []>} : vector<24x48xf32>, vector<48x80xf32>, vector<24x80xf32> -> vector<24x80xf32>
    %c1_37 = arith.constant 1 : index
    %c0_38 = arith.constant 0 : index
    %c0_39 = arith.constant 0 : index
    %35 = vector.load %arg5[%c1_37, %c0_38, %c0_39] : memref<3x80x80xf32, #tpu.memory_space<vmem>>, vector<1x80x80xf32>
    %36 = vector.shape_cast %35 : vector<1x80x80xf32> to vector<80x80xf32>
    %cst_40 = arith.constant dense<0.000000e+00> : vector<24x80xf32>
    %37 = tpu.matmul %34, %36, %cst_40 {dimension_numbers = #tpu.dot_dimension_numbers<[1], [0], [0], [1], [0, 0, 1, 1], [], []>} : vector<24x80xf32>, vector<80x80xf32>, vector<24x80xf32> -> vector<24x80xf32>
    %38 = arith.addf %31, %37 : vector<24x80xf32>
    %c2_41 = arith.constant 2 : index
    %c0_42 = arith.constant 0 : index
    %c0_43 = arith.constant 0 : index
    %39 = vector.load %arg4[%c2_41, %c0_42, %c0_43] : memref<3x24x48xf32, #tpu.memory_space<vmem>>, vector<1x24x48xf32>
    %40 = vector.shape_cast %39 : vector<1x24x48xf32> to vector<24x48xf32>
    %cst_44 = arith.constant dense<0.000000e+00> : vector<24x80xf32>
    %41 = tpu.matmul %40, %25, %cst_44 {dimension_numbers = #tpu.dot_dimension_numbers<[1], [0], [0], [1], [0, 0, 1, 1], [], []>} : vector<24x48xf32>, vector<48x80xf32>, vector<24x80xf32> -> vector<24x80xf32>
    %c2_45 = arith.constant 2 : index
    %c0_46 = arith.constant 0 : index
    %c0_47 = arith.constant 0 : index
    %42 = vector.load %arg5[%c2_45, %c0_46, %c0_47] : memref<3x80x80xf32, #tpu.memory_space<vmem>>, vector<1x80x80xf32>
    %43 = vector.shape_cast %42 : vector<1x80x80xf32> to vector<80x80xf32>
    %cst_48 = arith.constant dense<0.000000e+00> : vector<24x80xf32>
    %44 = tpu.matmul %41, %43, %cst_48 {dimension_numbers = #tpu.dot_dimension_numbers<[1], [0], [0], [1], [0, 0, 1, 1], [], []>} : vector<24x80xf32>, vector<80x80xf32>, vector<24x80xf32> -> vector<24x80xf32>
    %45 = arith.addf %38, %44 : vector<24x80xf32>
    %c0_49 = arith.constant 0 : index
    %c0_50 = arith.constant 0 : index
    %46 = vector.load %arg6[%c0_49, %c0_50] : memref<1x80xf32, #tpu.memory_space<vmem>>, vector<1x80xf32>
    %47 = vector.broadcast %46 : vector<1x80xf32> to vector<24x80xf32>
    %48 = arith.addf %45, %47 : vector<24x80xf32>
    %cst_51 = arith.constant 0.000000e+00 : f32
    %49 = vector.broadcast %cst_51 : f32 to vector<24x80xf32>
    %50 = arith.maximumf %48, %49 : vector<24x80xf32>
    %c0_52 = arith.constant 0 : index
    %c0_53 = arith.constant 0 : index
    %c0_54 = arith.constant 0 : index
    %51 = vector.load %arg7[%c0_52, %c0_53, %c0_54] : memref<3x12x24xf32, #tpu.memory_space<vmem>>, vector<1x12x24xf32>
    %52 = vector.shape_cast %51 : vector<1x12x24xf32> to vector<12x24xf32>
    %cst_55 = arith.constant dense<0.000000e+00> : vector<12x80xf32>
    %53 = tpu.matmul %52, %50, %cst_55 {dimension_numbers = #tpu.dot_dimension_numbers<[1], [0], [0], [1], [0, 0, 1, 1], [], []>} : vector<12x24xf32>, vector<24x80xf32>, vector<12x80xf32> -> vector<12x80xf32>
    %c0_56 = arith.constant 0 : index
    %c0_57 = arith.constant 0 : index
    %c0_58 = arith.constant 0 : index
    %54 = vector.load %arg8[%c0_56, %c0_57, %c0_58] : memref<3x80x80xf32, #tpu.memory_space<vmem>>, vector<1x80x80xf32>
    %55 = vector.shape_cast %54 : vector<1x80x80xf32> to vector<80x80xf32>
    %cst_59 = arith.constant dense<0.000000e+00> : vector<12x80xf32>
    %56 = tpu.matmul %53, %55, %cst_59 {dimension_numbers = #tpu.dot_dimension_numbers<[1], [0], [0], [1], [0, 0, 1, 1], [], []>} : vector<12x80xf32>, vector<80x80xf32>, vector<12x80xf32> -> vector<12x80xf32>
    %c1_60 = arith.constant 1 : index
    %c0_61 = arith.constant 0 : index
    %c0_62 = arith.constant 0 : index
    %57 = vector.load %arg7[%c1_60, %c0_61, %c0_62] : memref<3x12x24xf32, #tpu.memory_space<vmem>>, vector<1x12x24xf32>
    %58 = vector.shape_cast %57 : vector<1x12x24xf32> to vector<12x24xf32>
    %cst_63 = arith.constant dense<0.000000e+00> : vector<12x80xf32>
    %59 = tpu.matmul %58, %50, %cst_63 {dimension_numbers = #tpu.dot_dimension_numbers<[1], [0], [0], [1], [0, 0, 1, 1], [], []>} : vector<12x24xf32>, vector<24x80xf32>, vector<12x80xf32> -> vector<12x80xf32>
    %c1_64 = arith.constant 1 : index
    %c0_65 = arith.constant 0 : index
    %c0_66 = arith.constant 0 : index
    %60 = vector.load %arg8[%c1_64, %c0_65, %c0_66] : memref<3x80x80xf32, #tpu.memory_space<vmem>>, vector<1x80x80xf32>
    %61 = vector.shape_cast %60 : vector<1x80x80xf32> to vector<80x80xf32>
    %cst_67 = arith.constant dense<0.000000e+00> : vector<12x80xf32>
    %62 = tpu.matmul %59, %61, %cst_67 {dimension_numbers = #tpu.dot_dimension_numbers<[1], [0], [0], [1], [0, 0, 1, 1], [], []>} : vector<12x80xf32>, vector<80x80xf32>, vector<12x80xf32> -> vector<12x80xf32>
    %63 = arith.addf %56, %62 : vector<12x80xf32>
    %c2_68 = arith.constant 2 : index
    %c0_69 = arith.constant 0 : index
    %c0_70 = arith.constant 0 : index
    %64 = vector.load %arg7[%c2_68, %c0_69, %c0_70] : memref<3x12x24xf32, #tpu.memory_space<vmem>>, vector<1x12x24xf32>
    %65 = vector.shape_cast %64 : vector<1x12x24xf32> to vector<12x24xf32>
    %cst_71 = arith.constant dense<0.000000e+00> : vector<12x80xf32>
    %66 = tpu.matmul %65, %50, %cst_71 {dimension_numbers = #tpu.dot_dimension_numbers<[1], [0], [0], [1], [0, 0, 1, 1], [], []>} : vector<12x24xf32>, vector<24x80xf32>, vector<12x80xf32> -> vector<12x80xf32>
    %c2_72 = arith.constant 2 : index
    %c0_73 = arith.constant 0 : index
    %c0_74 = arith.constant 0 : index
    %67 = vector.load %arg8[%c2_72, %c0_73, %c0_74] : memref<3x80x80xf32, #tpu.memory_space<vmem>>, vector<1x80x80xf32>
    %68 = vector.shape_cast %67 : vector<1x80x80xf32> to vector<80x80xf32>
    %cst_75 = arith.constant dense<0.000000e+00> : vector<12x80xf32>
    %69 = tpu.matmul %66, %68, %cst_75 {dimension_numbers = #tpu.dot_dimension_numbers<[1], [0], [0], [1], [0, 0, 1, 1], [], []>} : vector<12x80xf32>, vector<80x80xf32>, vector<12x80xf32> -> vector<12x80xf32>
    %70 = arith.addf %63, %69 : vector<12x80xf32>
    %c0_76 = arith.constant 0 : index
    %c0_77 = arith.constant 0 : index
    %71 = vector.load %arg9[%c0_76, %c0_77] : memref<1x80xf32, #tpu.memory_space<vmem>>, vector<1x80xf32>
    %72 = vector.broadcast %71 : vector<1x80xf32> to vector<12x80xf32>
    %73 = arith.addf %70, %72 : vector<12x80xf32>
    %cst_78 = arith.constant 0.000000e+00 : f32
    %74 = vector.broadcast %cst_78 : f32 to vector<12x80xf32>
    %75 = arith.maximumf %73, %74 : vector<12x80xf32>
    %c0_79 = arith.constant 0 : index
    %c0_80 = arith.constant 0 : index
    %c0_81 = arith.constant 0 : index
    %76 = vector.load %arg10[%c0_79, %c0_80, %c0_81] : memref<6x2x12xf32, #tpu.memory_space<vmem>>, vector<1x2x12xf32>
    %77 = vector.shape_cast %76 : vector<1x2x12xf32> to vector<2x12xf32>
    %cst_82 = arith.constant dense<0.000000e+00> : vector<2x80xf32>
    %78 = tpu.matmul %77, %75, %cst_82 {dimension_numbers = #tpu.dot_dimension_numbers<[1], [0], [0], [1], [0, 0, 1, 1], [], []>} : vector<2x12xf32>, vector<12x80xf32>, vector<2x80xf32> -> vector<2x80xf32>
    %c0_83 = arith.constant 0 : index
    %c0_84 = arith.constant 0 : index
    %c0_85 = arith.constant 0 : index
    %79 = vector.load %arg11[%c0_83, %c0_84, %c0_85] : memref<6x80x250xf32, #tpu.memory_space<vmem>>, vector<1x80x250xf32>
    %80 = vector.shape_cast %79 : vector<1x80x250xf32> to vector<80x250xf32>
    %cst_86 = arith.constant dense<0.000000e+00> : vector<2x250xf32>
    %81 = tpu.matmul %78, %80, %cst_86 {dimension_numbers = #tpu.dot_dimension_numbers<[1], [0], [0], [1], [0, 0, 1, 1], [], []>} : vector<2x80xf32>, vector<80x250xf32>, vector<2x250xf32> -> vector<2x250xf32>
    %c1_87 = arith.constant 1 : index
    %c0_88 = arith.constant 0 : index
    %c0_89 = arith.constant 0 : index
    %82 = vector.load %arg10[%c1_87, %c0_88, %c0_89] : memref<6x2x12xf32, #tpu.memory_space<vmem>>, vector<1x2x12xf32>
    %83 = vector.shape_cast %82 : vector<1x2x12xf32> to vector<2x12xf32>
    %cst_90 = arith.constant dense<0.000000e+00> : vector<2x80xf32>
    %84 = tpu.matmul %83, %75, %cst_90 {dimension_numbers = #tpu.dot_dimension_numbers<[1], [0], [0], [1], [0, 0, 1, 1], [], []>} : vector<2x12xf32>, vector<12x80xf32>, vector<2x80xf32> -> vector<2x80xf32>
    %c1_91 = arith.constant 1 : index
    %c0_92 = arith.constant 0 : index
    %c0_93 = arith.constant 0 : index
    %85 = vector.load %arg11[%c1_91, %c0_92, %c0_93] : memref<6x80x250xf32, #tpu.memory_space<vmem>>, vector<1x80x250xf32>
    %86 = vector.shape_cast %85 : vector<1x80x250xf32> to vector<80x250xf32>
    %cst_94 = arith.constant dense<0.000000e+00> : vector<2x250xf32>
    %87 = tpu.matmul %84, %86, %cst_94 {dimension_numbers = #tpu.dot_dimension_numbers<[1], [0], [0], [1], [0, 0, 1, 1], [], []>} : vector<2x80xf32>, vector<80x250xf32>, vector<2x250xf32> -> vector<2x250xf32>
    %88 = arith.addf %81, %87 : vector<2x250xf32>
    %c2_95 = arith.constant 2 : index
    %c0_96 = arith.constant 0 : index
    %c0_97 = arith.constant 0 : index
    %89 = vector.load %arg10[%c2_95, %c0_96, %c0_97] : memref<6x2x12xf32, #tpu.memory_space<vmem>>, vector<1x2x12xf32>
    %90 = vector.shape_cast %89 : vector<1x2x12xf32> to vector<2x12xf32>
    %cst_98 = arith.constant dense<0.000000e+00> : vector<2x80xf32>
    %91 = tpu.matmul %90, %75, %cst_98 {dimension_numbers = #tpu.dot_dimension_numbers<[1], [0], [0], [1], [0, 0, 1, 1], [], []>} : vector<2x12xf32>, vector<12x80xf32>, vector<2x80xf32> -> vector<2x80xf32>
    %c2_99 = arith.constant 2 : index
    %c0_100 = arith.constant 0 : index
    %c0_101 = arith.constant 0 : index
    %92 = vector.load %arg11[%c2_99, %c0_100, %c0_101] : memref<6x80x250xf32, #tpu.memory_space<vmem>>, vector<1x80x250xf32>
    %93 = vector.shape_cast %92 : vector<1x80x250xf32> to vector<80x250xf32>
    %cst_102 = arith.constant dense<0.000000e+00> : vector<2x250xf32>
    %94 = tpu.matmul %91, %93, %cst_102 {dimension_numbers = #tpu.dot_dimension_numbers<[1], [0], [0], [1], [0, 0, 1, 1], [], []>} : vector<2x80xf32>, vector<80x250xf32>, vector<2x250xf32> -> vector<2x250xf32>
    %95 = arith.addf %88, %94 : vector<2x250xf32>
    %c3 = arith.constant 3 : index
    %c0_103 = arith.constant 0 : index
    %c0_104 = arith.constant 0 : index
    %96 = vector.load %arg10[%c3, %c0_103, %c0_104] : memref<6x2x12xf32, #tpu.memory_space<vmem>>, vector<1x2x12xf32>
    %97 = vector.shape_cast %96 : vector<1x2x12xf32> to vector<2x12xf32>
    %cst_105 = arith.constant dense<0.000000e+00> : vector<2x80xf32>
    %98 = tpu.matmul %97, %75, %cst_105 {dimension_numbers = #tpu.dot_dimension_numbers<[1], [0], [0], [1], [0, 0, 1, 1], [], []>} : vector<2x12xf32>, vector<12x80xf32>, vector<2x80xf32> -> vector<2x80xf32>
    %c3_106 = arith.constant 3 : index
    %c0_107 = arith.constant 0 : index
    %c0_108 = arith.constant 0 : index
    %99 = vector.load %arg11[%c3_106, %c0_107, %c0_108] : memref<6x80x250xf32, #tpu.memory_space<vmem>>, vector<1x80x250xf32>
    %100 = vector.shape_cast %99 : vector<1x80x250xf32> to vector<80x250xf32>
    %cst_109 = arith.constant dense<0.000000e+00> : vector<2x250xf32>
    %101 = tpu.matmul %98, %100, %cst_109 {dimension_numbers = #tpu.dot_dimension_numbers<[1], [0], [0], [1], [0, 0, 1, 1], [], []>} : vector<2x80xf32>, vector<80x250xf32>, vector<2x250xf32> -> vector<2x250xf32>
    %102 = arith.addf %95, %101 : vector<2x250xf32>
    %c4 = arith.constant 4 : index
    %c0_110 = arith.constant 0 : index
    %c0_111 = arith.constant 0 : index
    %103 = vector.load %arg10[%c4, %c0_110, %c0_111] : memref<6x2x12xf32, #tpu.memory_space<vmem>>, vector<1x2x12xf32>
    %104 = vector.shape_cast %103 : vector<1x2x12xf32> to vector<2x12xf32>
    %cst_112 = arith.constant dense<0.000000e+00> : vector<2x80xf32>
    %105 = tpu.matmul %104, %75, %cst_112 {dimension_numbers = #tpu.dot_dimension_numbers<[1], [0], [0], [1], [0, 0, 1, 1], [], []>} : vector<2x12xf32>, vector<12x80xf32>, vector<2x80xf32> -> vector<2x80xf32>
    %c4_113 = arith.constant 4 : index
    %c0_114 = arith.constant 0 : index
    %c0_115 = arith.constant 0 : index
    %106 = vector.load %arg11[%c4_113, %c0_114, %c0_115] : memref<6x80x250xf32, #tpu.memory_space<vmem>>, vector<1x80x250xf32>
    %107 = vector.shape_cast %106 : vector<1x80x250xf32> to vector<80x250xf32>
    %cst_116 = arith.constant dense<0.000000e+00> : vector<2x250xf32>
    %108 = tpu.matmul %105, %107, %cst_116 {dimension_numbers = #tpu.dot_dimension_numbers<[1], [0], [0], [1], [0, 0, 1, 1], [], []>} : vector<2x80xf32>, vector<80x250xf32>, vector<2x250xf32> -> vector<2x250xf32>
    %109 = arith.addf %102, %108 : vector<2x250xf32>
    %c5 = arith.constant 5 : index
    %c0_117 = arith.constant 0 : index
    %c0_118 = arith.constant 0 : index
    %110 = vector.load %arg10[%c5, %c0_117, %c0_118] : memref<6x2x12xf32, #tpu.memory_space<vmem>>, vector<1x2x12xf32>
    %111 = vector.shape_cast %110 : vector<1x2x12xf32> to vector<2x12xf32>
    %cst_119 = arith.constant dense<0.000000e+00> : vector<2x80xf32>
    %112 = tpu.matmul %111, %75, %cst_119 {dimension_numbers = #tpu.dot_dimension_numbers<[1], [0], [0], [1], [0, 0, 1, 1], [], []>} : vector<2x12xf32>, vector<12x80xf32>, vector<2x80xf32> -> vector<2x80xf32>
    %c5_120 = arith.constant 5 : index
    %c0_121 = arith.constant 0 : index
    %c0_122 = arith.constant 0 : index
    %113 = vector.load %arg11[%c5_120, %c0_121, %c0_122] : memref<6x80x250xf32, #tpu.memory_space<vmem>>, vector<1x80x250xf32>
    %114 = vector.shape_cast %113 : vector<1x80x250xf32> to vector<80x250xf32>
    %cst_123 = arith.constant dense<0.000000e+00> : vector<2x250xf32>
    %115 = tpu.matmul %112, %114, %cst_123 {dimension_numbers = #tpu.dot_dimension_numbers<[1], [0], [0], [1], [0, 0, 1, 1], [], []>} : vector<2x80xf32>, vector<80x250xf32>, vector<2x250xf32> -> vector<2x250xf32>
    %116 = arith.addf %109, %115 : vector<2x250xf32>
    %c0_124 = arith.constant 0 : index
    %c0_125 = arith.constant 0 : index
    %117 = vector.load %arg12[%c0_124, %c0_125] : memref<1x250xf32, #tpu.memory_space<vmem>>, vector<1x250xf32>
    %118 = vector.broadcast %117 : vector<1x250xf32> to vector<2x250xf32>
    %119 = arith.addf %116, %118 : vector<2x250xf32>
    %c0_126 = arith.constant 0 : index
    %c0_127 = arith.constant 0 : index
    %120 = vector.load %arg13[%c0_126, %c0_127] : memref<250x120xf32, #tpu.memory_space<vmem>>, vector<250x120xf32>
    %cst_128 = arith.constant dense<0.000000e+00> : vector<2x120xf32>
    %121 = tpu.matmul %119, %120, %cst_128 {dimension_numbers = #tpu.dot_dimension_numbers<[1], [0], [0], [1], [0, 0, 1, 1], [], []>} : vector<2x250xf32>, vector<250x120xf32>, vector<2x120xf32> -> vector<2x120xf32>
    %c0_129 = arith.constant 0 : index
    %c0_130 = arith.constant 0 : index
    %122 = vector.load %arg14[%c0_129, %c0_130] : memref<1x120xf32, #tpu.memory_space<vmem>>, vector<1x120xf32>
    %123 = vector.broadcast %122 : vector<1x120xf32> to vector<2x120xf32>
    %124 = arith.addf %121, %123 : vector<2x120xf32>
    %c0_131 = arith.constant 0 : index
    %c0_132 = arith.constant 0 : index
    %125 = vector.load %arg15[%c0_131, %c0_132] : memref<120x6xf32, #tpu.memory_space<vmem>>, vector<120x6xf32>
    %cst_133 = arith.constant dense<0.000000e+00> : vector<2x6xf32>
    %126 = tpu.matmul %124, %125, %cst_133 {dimension_numbers = #tpu.dot_dimension_numbers<[1], [0], [0], [1], [0, 0, 1, 1], [], []>} : vector<2x120xf32>, vector<120x6xf32>, vector<2x6xf32> -> vector<2x6xf32>
    %c0_134 = arith.constant 0 : index
    %c0_135 = arith.constant 0 : index
    %127 = vector.load %arg16[%c0_134, %c0_135] : memref<1x6xf32, #tpu.memory_space<vmem>>, vector<1x6xf32>
    %128 = vector.broadcast %127 : vector<1x6xf32> to vector<2x6xf32>
    %129 = arith.addf %126, %128 : vector<2x6xf32>
    %c0_136 = arith.constant 0 : index
    %c0_137 = arith.constant 0 : index
    %130 = vector.load %arg17[%c0_136, %c0_137] : memref<2x6xf32, #tpu.memory_space<vmem>>, vector<2x6xf32>
    tpu.vector_store %arg17[%c0_136, %c0_137], %129 {strides = array<i32>} : memref<2x6xf32, #tpu.memory_space<vmem>>, vector<2x6xf32>,
    return
  }
}

</mosaic_0001>

<bundles_post_ra>
// kernel: net_forward.1
= control target key start
LH: loop header
LB: loop body
LE: loop exit
PB: predicated region body
PF: predicated region fallthrough
CT: control target
= control target key end

     0   :  { %s2902_s0 = inlined_call_operand.vmem [shape: f32[96,40], index: 0, kind: input, shape index: {}]   ;;  %s2903_s1 = inlined_call_operand.hbm [shape: f32[3,48,96], index: 1, kind: input, shape index: {}]   ;;  %s2904_s2 = inlined_call_operand.hbm [shape: f32[3,40,80], index: 2, kind: input, shape index: {}]   ;;  %s2905_s3 = inlined_call_operand.hbm [shape: f32[1,80], index: 3, kind: input, shape index: {}]   ;;  %s2906_s4 = inlined_call_operand.vmem [shape: f32[3,24,48], index: 4, kind: input, shape index: {}]   ;;  %s2907_s5 = inlined_call_operand.vmem [shape: f32[3,80,80], index: 5, kind: input, shape index: {}]   ;;  %s2908_s6 = inlined_call_operand.hbm [shape: f32[1,80], index: 6, kind: input, shape index: {}]   ;;  %s2909_s7 = inlined_call_operand.hbm [shape: f32[3,12,24], index: 7, kind: input, shape index: {}]   ;;  %s2910_s8 = inlined_call_operand.vmem [shape: f32[3,80,80], index: 8, kind: input, shape index: {}]   ;;  %s2911_s9 = inlined_call_operand.hbm [shape: f32[1,80], index: 9, kind: input, shape index: {}]   ;;  %s2912_s10 = inlined_call_operand.vmem [shape: f32[6,2,12], index: 10, kind: input, shape index: {}]   ;;  %s2913_s11 = inlined_call_operand.hbm [shape: f32[6,80,250], index: 11, kind: input, shape index: {}]   ;;  %s2914_s12 = inlined_call_operand.vmem [shape: f32[1,250], index: 12, kind: input, shape index: {}]   ;;  %s2915_s13 = inlined_call_operand.vmem [shape: f32[250,120], index: 13, kind: input, shape index: {}]   ;;  %s2916_s14 = inlined_call_operand.hbm [shape: f32[1,120], index: 14, kind: input, shape index: {}]   ;;  %s2917_s15 = inlined_call_operand.vmem [shape: f32[120,6], index: 15, kind: input, shape index: {}]   ;;  %s2918_s16 = inlined_call_operand.hbm [shape: f32[1,6], index: 16, kind: input, shape index: {}]   ;;  %s2919_s17 = inlined_call_operand.hbm [shape: f32[2,6], index: 17, kind: output, shape index: {}]  }
   0x1   :  { %2923 = sst [smem:[#allocation24_spill]] %s2902_s0 }
   0x2   :  { %2924 = sst [smem:[#allocation25_spill]] %s2903_s1 }
   0x3   :  { %22 = vsyncpa [#allocation3], 0 }
   0x4   :  { %23 = vsyncpa [#allocation6], 0 }
   0x5   :  { %24 = vsyncpa [#allocation9], 0 }
   0x6   :  { %25 = vsyncpa [#allocation12], 0 }
   0x7   :  { %26 = vsyncpa [#allocation15], 0 }
   0x8   :  { %27 = vsyncpa [#allocation4], 0  ;;  %s47_s26 = sshll.u32 %s2904_s2, 4  ;;  %s2189_s27 = smov [#allocation5]   ;;  %s48_s26 = int_to_ptr.hbm [resolvable:$true] %s47_s26 }
   0x9   :  { %s49_s28 = sshll.u32 %s2189_s27, 4  ;;  %s76_s30 = sshll.u32 %s2908_s6, 4  ;;  %s50_s28 = int_to_ptr.vmem [resolvable:$true] %s49_s28  ;;  %s77_s30 = int_to_ptr.hbm [resolvable:$true] %s76_s30 }
   0xa   :  { %s2921_s18 = smov 128   ;;  %s2191_s19 = smov 8  }
   0xb   :  { %55 = dma.hbm_to_vmem [thread:$0]  %s48_s26, 1920, %s50_s28, [#allocation6], %s2921_s18, %s2921_s18, %s2191_s19  }
   0xc   :  { %s2192_s1 = smov [#allocation8]   ;;  %s102_s2 = sshll.u32 %s2911_s9, 4  ;;  %s103_s2 = int_to_ptr.hbm [resolvable:$true] %s102_s2 }
   0xd   :  { %s78_s20 = sshll.u32 %s2192_s1, 4  ;;  %s132_s6 = sshll.u32 %s2916_s14, 4  ;;  %s79_s20 = int_to_ptr.vmem [resolvable:$true] %s78_s20  ;;  %s133_s6 = int_to_ptr.hbm [resolvable:$true] %s132_s6 }
   0xe   :  { %81 = dma.hbm_to_vmem [thread:$0]  %s77_s30, 16, %s79_s20, [#allocation9]  }
   0xf   :  { %s2193_s25 = smov [#allocation11]   ;;  %s2194_s26 = smov [#allocation14]  }
  0x10   :  { %s104_s27 = sshll.u32 %s2193_s25, 4  ;;  %s134_s28 = sshll.u32 %s2194_s26, 4  ;;  %s105_s27 = int_to_ptr.vmem [resolvable:$true] %s104_s27  ;;  %s135_s28 = int_to_ptr.vmem [resolvable:$true] %s134_s28 }
  0x11   :  { %107 = dma.hbm_to_vmem [thread:$0]  %s103_s2, 16, %s105_s27, [#allocation12]  }
  0x12   :  { %s2925_s1 = sld [smem:[#allocation25_spill]]  ;;  %s61_s20 = sshll.u32 %s2905_s3, 4  ;;  %s62_s20 = int_to_ptr.hbm [resolvable:$true] %s61_s20 }
  0x13   :  { %137 = dma.hbm_to_vmem [thread:$0]  %s133_s6, 16, %s135_s28, [#allocation15]  }
  0x14   :  { %s2195_s21 = smov [#allocation2]   ;;  %s2926_s22 = smov 128  }
  0x15   :  { %s36_s14 = sshll.u32 %s2195_s21, 4  ;;  %s2196_s2 = smov [#allocation7]   ;;  %s37_s14 = int_to_ptr.vmem [resolvable:$true] %s36_s14 }
  0x16   :  { %s63_s23 = sshll.u32 %s2196_s2, 4  ;;  %s86_s27 = sshll.u32 %s2909_s7, 4  ;;  %s64_s23 = int_to_ptr.vmem [resolvable:$true] %s63_s23  ;;  %s87_s27 = int_to_ptr.hbm [resolvable:$true] %s86_s27 }
  0x17   :  { %66 = dma.hbm_to_vmem [thread:$0]  %s62_s20, 16, %s64_s23, [#allocation6]  }
  0x18   :  { %s34_s18 = sshll.u32 %s2925_s1, 4  ;;  %s114_s3 = sshll.u32 %s2913_s11, 4  ;;  %s35_s18 = int_to_ptr.hbm [resolvable:$true] %s34_s18  ;;  %s115_s3 = int_to_ptr.hbm [resolvable:$true] %s114_s3 }
  0x19   :  { %42 = dma.hbm_to_vmem [thread:$0]  %s35_s18, 2304, %s37_s14, [#allocation3], %s2926_s22, %s2926_s22, %s2191_s19  }
  0x1a   :  { %s2197_s28 = smov [#allocation10]   ;;  %s2198_s18 = smov [#allocation13]  }
  0x1b   :  { %s88_s29 = sshll.u32 %s2197_s28, 4  ;;  %s116_s0 = sshll.u32 %s2198_s18, 4  ;;  %s89_s29 = int_to_ptr.vmem [resolvable:$true] %s88_s29  ;;  %s117_s0 = int_to_ptr.vmem [resolvable:$true] %s116_s0 }
  0x1c   :  { %94 = dma.hbm_to_vmem [thread:$0]  %s87_s27, 768, %s89_s29, [#allocation9], %s2926_s22, %s2926_s22, %s2191_s19  }
  0x1d   :  { %s2199_s1 = smov 256   ;;  %s2200_s7 = smov 16  }
  0x1e   :  { %122 = dma.hbm_to_vmem [thread:$0]  %s115_s3, 15360, %s117_s0, [#allocation12], %s2199_s1, %s2199_s1, %s2200_s7  }
  0x1f   :  { %s145_s20 = sshll.u32 %s2918_s16, 4  ;;  %s2201_s11 = smov [#allocation16]   ;;  %s146_s20 = int_to_ptr.hbm [resolvable:$true] %s145_s20 }
  0x20   :  { %s147_s21 = sshll.u32 %s2201_s11, 4  ;;  %s148_s21 = int_to_ptr.vmem [resolvable:$true] %s147_s21 }
  0x21   :  { %150 = dma.hbm_to_vmem [thread:$0]  %s146_s20, 16, %s148_s21, [#allocation15]  }
  0x22   :  { %2177 = dma.done.wait [#allocation3], 2304  }
  0x23   :  { %2178 = vsyncadd [#allocation3], 4294964992 }
  0x24   :  { %2179 = dma.done.wait [#allocation6], 1936  }
  0x25   :  { %2180 = vsyncadd [#allocation6], 4294965360 }
  0x26   :  { %2181 = dma.done.wait [#allocation9], 784  }
  0x27   :  { %2182 = vsyncadd [#allocation9], 4294966512 }
  0x28   :  { %2183 = dma.done.wait [#allocation12], 15376  }
  0x29   :  { %2184 = vsyncadd [#allocation12], 4294951920 }
  0x2a   :  { %2185 = dma.done.wait [#allocation15], 32  }
  0x2b   :  { %2186 = vsyncadd [#allocation15], 4294967264  ;;  %s2927_s22 = sld [smem:[#allocation24_spill]]  ;;  %v199_v12 = vld [vmem:[#allocation2] sm:$0xff]  ;;  %vm205_vm0 = vcmask 785408   ;;  %v265_v13 = vld [vmem:[#allocation2 + $0x30] sm:$0xff] }
  0x2c   :  { %v200_v14 = vld [vmem:[#allocation2 + $0x8] sm:$0xff]  ;;  %v266_v15 = vld [vmem:[#allocation2 + $0x38] sm:$0xff]  ;;  %v263_v17 = vld [vmem:[#allocation5 + $0x20] sm:$0xff]  ;;  %vm330_vm1 = vcmask 326656   ;;  %vm581_vm2 = vcmask 392192   ;;  %vm677_vm3 = vcmask 654336  }
  0x2d   :  { %v329_v16 = vld [vmem:[#allocation5 + $0x48] sm:$0xff]  ;;  %v328_v18 = vld [vmem:[#allocation5 + $0x40] sm:$0xff]  ;;  %413 = vmatpush.msra.mxu3 %v263_v17  ;;  %v262_v19 = vld [vmem:[#allocation5 + $0x18] sm:$0xff]  ;;  %vm848_vm4 = vcmask 195584   ;;  %vm1076_vm5 = vcmask 1043456   ;;  %vm1072_vm6 = vcmask 97280  }
  0x2e   :  { %360 = vmatpush.msra.mxu2 %v329_v16  ;;  %v327_v20 = vld [vmem:[#allocation5 + $0x38] sm:$0xff]  ;;  %v261_v21 = vld [vmem:[#allocation5 + $0x10] sm:$0xff]  ;;  %v260_v23 = vld [vmem:[#allocation5 + $0x8] sm:$0xff]  ;;  %vm1664_vm7 = vcmask 1041408   ;;  %vm1660_vm8 = vcmask 998400   ;;  %vm1727_vm9 = vcmask 982016  }
  0x2f   :  { %414 = vmatpush.msra.mxu3 %v262_v19  ;;  %v326_v22 = vld [vmem:[#allocation5 + $0x30] sm:$0xff]  ;;  %v201_v24 = vld [vmem:[#allocation2 + $0x10] sm:$0xff]  ;;  %v202_v26 = vld [vmem:[#allocation2 + $0x18] sm:$0xff]  ;;  %s2202_s7 = smov [#allocation17]   ;;  %s1760_s20 = sshll.u32 %s2919_s17, 4  ;;  %vm1751_vm10 = vcmask 41984   ;;  %s1761_s20 = int_to_ptr.hbm [resolvable:$true] %s1760_s20 }
  0x30   :  { %361 = vmatpush.msra.mxu2 %v328_v18  ;;  %v267_v25 = vld [vmem:[#allocation2 + $0x40] sm:$0xff]  ;;  %v268_v27 = vld [vmem:[#allocation2 + $0x48] sm:$0xff]  ;;  %v269_v29 = vld [vmem:[#allocation2 + $0x50] sm:$0xff]  ;;  %s1758_s9 = sshll.u32 %s2202_s7, 4  ;;  %s1759_s9 = int_to_ptr.vmem [resolvable:$true] %s1758_s9 }
  0x31   :  { %v2332_v0 = vld [vmem:[%s2927_s22 + $0x58] sm:$0xff]  ;;  %v2337_v1 = vld [vmem:[%s2927_s22 + $0x50] sm:$0xff]  ;;  %v2344_v2 = vld [vmem:[%s2927_s22 + $0x48] sm:$0xff]  ;;  %415 = vmatpush.msra.mxu3 %v261_v21 }
  0x32   :  { %228 = vmatpush.msra.mxu0 %v2332_v0  ;;  %293 = vmatpush.msra.mxu1 %v2332_v0  ;;  %v2351_v3 = vld [vmem:[%s2927_s22 + $0x40] sm:$0xff]  ;;  %v2358_v4 = vld [vmem:[%s2927_s22 + $0x38] sm:$0xff]  ;;  %v2365_v5 = vld [vmem:[%s2927_s22 + $0x30] sm:$0xff] }
  0x33   :  { %v2372_v6 = vld [vmem:[%s2927_s22 + $0x28] sm:$0xff]  ;;  %v2379_v7 = vld [vmem:[%s2927_s22 + $0x20] sm:$0xff]  ;;  %v2386_v8 = vld [vmem:[%s2927_s22 + $0x18] sm:$0xff]  ;;  %362 = vmatpush.msra.mxu2 %v327_v20  ;;  %416 = vmatpush.msra.mxu3 %v260_v23 }
  0x34   :  { %229 = vmatpush.msra.mxu0 %v2337_v1  ;;  %294 = vmatpush.msra.mxu1 %v2337_v1  ;;  %v2393_v9 = vld [vmem:[%s2927_s22 + $0x10] sm:$0xff]  ;;  %v188_v10 = vld [vmem:[%s2927_s22 + $0x8] sm:$0xff]  ;;  %v187_v11 = vld [vmem:[%s2927_s22] sm:$0xff] }
  0x35   :  { %363 = vmatpush.msra.mxu2 %v326_v22  ;;  %v203_v28 = vld [vmem:[#allocation2 + $0x20] sm:$0xff]  ;;  %v204_v30 = vld [vmem:[#allocation2 + $0x28] sm:$0xff]  ;;  %v270_v31 = vld [vmem:[#allocation2 + $0x58] sm:$0xff] }
  0x36   :  { %230 = vmatpush.msra.mxu0 %v2344_v2  ;;  %295 = vmatpush.msra.mxu1 %v2344_v2  ;;  %v325_v32 = vld [vmem:[#allocation5 + $0x28] sm:$0xff]  ;;  %v259_v33 = vld [vmem:[#allocation5] sm:$0xff]  ;;  %v438_v46 = vld [vmem:[#allocation2 + $0x60] sm:$0xff] }
  0x37   :  { %364 = vmatpush.msra.mxu2 %v325_v32  ;;  %417 = vmatpush.msra.mxu3 %v259_v33  ;;  %v439_v47 = vld [vmem:[#allocation2 + $0x68] sm:$0xff]  ;;  %v440_v48 = vld [vmem:[#allocation2 + $0x70] sm:$0xff]  ;;  %v441_v49 = vld [vmem:[#allocation2 + $0x78] sm:$0xff] }
  0x38   :  { %231 = vmatpush.msra.mxu0 %v2351_v3  ;;  %296 = vmatpush.msra.mxu1 %v2351_v3  ;;  %v442_v50 = vld [vmem:[#allocation2 + $0x80] sm:$0xff]  ;;  %v443_v51 = vld [vmem:[#allocation2 + $0x88] sm:$0xff]  ;;  %v501_v59 = vld [vmem:[#allocation5 + $0x68] sm:$0xff] }
  0x39   :  { %466 = vmatpush.msrb.mxu2 %v2332_v0  ;;  %v502_v55 = vld [vmem:[#allocation5 + $0x70] sm:$0xff]  ;;  %v500_v60 = vld [vmem:[#allocation5 + $0x60] sm:$0xff]  ;;  %v499_v61 = vld [vmem:[#allocation5 + $0x58] sm:$0xff] }
  0x3a   :  { %232 = vmatpush.msra.mxu0 %v2358_v4  ;;  %297 = vmatpush.msra.mxu1 %v2358_v4  ;;  %v498_v62 = vld [vmem:[#allocation5 + $0x50] sm:$0xff] }
  0x3b   :  { %467 = vmatpush.msrb.mxu2 %v2337_v1  ;;  %532 = vmatpush.msrb.mxu3 %v502_v55  ;;  %v625_v55 = vld [vmem:[%s2907_s5 + $0x40] sm:$0xff] }
  0x3c   :  { %233 = vmatpush.msra.mxu0 %v2365_v5  ;;  %298 = vmatpush.msra.mxu1 %v2365_v5 }
  0x3d   :  { %468 = vmatpush.msrb.mxu2 %v2344_v2  ;;  %533 = vmatpush.msrb.mxu3 %v501_v59  ;;  %v1842_v59 = vld [vmem:[%s2907_s5 + $0xa8] sm:$0xff] }
  0x3e   :  { %234 = vmatpush.msra.mxu0 %v2372_v6  ;;  %299 = vmatpush.msra.mxu1 %v2372_v6 }
  0x3f   :  { %469 = vmatpush.msrb.mxu2 %v2351_v3  ;;  %534 = vmatpush.msrb.mxu3 %v500_v60  ;;  %v579_v60 = vld [vmem:[%s2906_s4 + $0x8] sm:$0xff] }
  0x40   :  { %235 = vmatpush.msra.mxu0 %v2379_v7  ;;  %300 = vmatpush.msra.mxu1 %v2379_v7 }
  0x41   :  { %470 = vmatpush.msrb.mxu2 %v2358_v4  ;;  %535 = vmatpush.msrb.mxu3 %v499_v61  ;;  %v623_v61 = vld [vmem:[%s2907_s5 + $0x30] sm:$0xff] }
  0x42   :  { %236 = vmatpush.msra.mxu0 %v2386_v8  ;;  %301 = vmatpush.msra.mxu1 %v2386_v8 }
  0x43   :  { %471 = vmatpush.msrb.mxu2 %v2365_v5  ;;  %536 = vmatpush.msrb.mxu3 %v498_v62  ;;  %v1836_v62 = vld [vmem:[%s2906_s4 + $0x38] sm:$0xff] }
  0x44   :  { %237 = vmatpush.msra.mxu0 %v2393_v9  ;;  %302 = vmatpush.msra.mxu1 %v2393_v9 }
  0x45   :  { %472 = vmatpush.msrb.mxu2 %v2372_v6 }
  0x46   :  { %238 = vmatpush.msra.mxu0 %v188_v10  ;;  %303 = vmatpush.msra.mxu1 %v188_v10 }
  0x47   :  { %473 = vmatpush.msrb.mxu2 %v2379_v7 }
  0x48   :  { %239 = vmatpush.msra.mxu0 %v187_v11  ;;  %304 = vmatpush.msra.mxu1 %v187_v11 }
  0x49   :  { %1774 = vmatmul.msk.f32.vlgmr.msra.gmra.mxu0 %vm205_vm0, %v199_v12  ;;  %1780 = vmatmul.msk.f32.vlgmr.msra.gmra.mxu1 %vm205_vm0, %v265_v13 }
  0x4a   :  { %474 = vmatpush.msrb.mxu2 %v2386_v8 }
  0x4c   :  { %475 = vmatpush.msrb.mxu2 %v2393_v9 }
  0x4e   :  { %476 = vmatpush.msrb.mxu2 %v188_v10 }
  0x50   :  { %477 = vmatpush.msrb.mxu2 %v187_v11 }
  0x51   :  { %1775 = vmatmul.msk.f32.gmra.mxu0 %vm205_vm0, %v200_v14  ;;  %1781 = vmatmul.msk.f32.gmra.mxu1 %vm205_vm0, %v266_v15 }
  0x59   :  { %1776 = vmatmul.msk.f32.gmra.mxu0 %vm205_vm0, %v201_v24  ;;  %1782 = vmatmul.msk.f32.gmra.mxu1 %vm205_vm0, %v267_v25  ;;  %v1932_v24 = vld [vmem:[#allocation7] ss:$0 sm:$0xff] }
  0x61   :  { %1777 = vmatmul.msk.f32.gmra.mxu0 %vm205_vm0, %v202_v26  ;;  %1783 = vmatmul.msk.f32.gmra.mxu1 %vm205_vm0, %v268_v27 }
  0x69   :  { %1778 = vmatmul.msk.f32.gmra.mxu0 %vm205_vm0, %v203_v28  ;;  %1784 = vmatmul.msk.f32.gmra.mxu1 %vm205_vm0, %v269_v29 }
  0x71   :  { %1779 = vmatmul.msk.f32.gmra.mxu0 %vm205_vm0, %v204_v30  ;;  %1785 = vmatmul.msk.f32.gmra.mxu1 %vm205_vm0, %v270_v31  ;;  %v1850_v30 = vld [vmem:[%s2907_s5 + $0xe8] sm:$0xff] }
  0xc6   :  { %v241_v34 = vpop.f32.mrf.mxu0  ;;  %v306_v35 = vpop.f32.mrf.mxu1 }
  0xc7   :  { %1786 = vmatmul.msk.f32.vlgmr.msra.gmra.mxu2 %vm330_vm1, %v306_v35  ;;  %1792 = vmatmul.msk.f32.vlgmr.msra.gmra.mxu3 %vm330_vm1, %v241_v34  ;;  %v1849_v34 = vld [vmem:[%s2907_s5 + $0xe0] sm:$0xff] }
  0xc8   :  { %813 = vmatpush.msra.mxu3 %v1850_v30 }
  0xca   :  { %814 = vmatpush.msra.mxu3 %v1849_v34 }
  0xce   :  { %v244_v36 = vpop.f32.mrf.mxu0  ;;  %v309_v37 = vpop.f32.mrf.mxu1 }
  0xcf   :  { %1787 = vmatmul.msk.f32.gmra.mxu2 %vm330_vm1, %v309_v37  ;;  %1793 = vmatmul.msk.f32.gmra.mxu3 %vm330_vm1, %v244_v36 }
  0xd6   :  { %v247_v38 = vpop.f32.mrf.mxu0  ;;  %v312_v39 = vpop.f32.mrf.mxu1 }
  0xd7   :  { %1788 = vmatmul.msk.f32.gmra.mxu2 %vm330_vm1, %v312_v39  ;;  %1794 = vmatmul.msk.f32.gmra.mxu3 %vm330_vm1, %v247_v38  ;;  %v1848_v38 = vld [vmem:[%s2907_s5 + $0xd8] sm:$0xff] }
  0xd8   :  { %815 = vmatpush.msra.mxu3 %v1848_v38 }
  0xde   :  { %v250_v40 = vpop.f32.mrf.mxu0  ;;  %v315_v41 = vpop.f32.mrf.mxu1 }
  0xdf   :  { %1789 = vmatmul.msk.f32.gmra.mxu2 %vm330_vm1, %v315_v41  ;;  %1795 = vmatmul.msk.f32.gmra.mxu3 %vm330_vm1, %v250_v40  ;;  %v1847_v41 = vld [vmem:[%s2907_s5 + $0xd0] sm:$0xff] }
  0xe0   :  { %816 = vmatpush.msra.mxu3 %v1847_v41 }
  0xe6   :  { %v253_v42 = vpop.f32.mrf.mxu0  ;;  %v318_v43 = vpop.f32.mrf.mxu1 }
  0xe7   :  { %1790 = vmatmul.msk.f32.gmra.mxu2 %vm330_vm1, %v318_v43  ;;  %1796 = vmatmul.msk.f32.gmra.mxu3 %vm330_vm1, %v253_v42 }
  0xee   :  { %v256_v44 = vpop.f32.mrf.mxu0  ;;  %v321_v45 = vpop.f32.mrf.mxu1 }
  0xef   :  { %1791 = vmatmul.msk.f32.gmra.mxu2 %vm330_vm1, %v321_v45  ;;  %1797 = vmatmul.msk.f32.gmra.mxu3 %vm330_vm1, %v256_v44  ;;  %v1846_v44 = vld [vmem:[%s2907_s5 + $0xc8] sm:$0xff] }
  0xf0   :  { %817 = vmatpush.msra.mxu3 %v1846_v44  ;;  %v1867_v44 = vld [vmem:[%s2910_s8 + $0x98] sm:$0xff] }
  0xf7   :  { %1798 = vmatmul.msk.f32.vlgmr.msrb.gmra.mxu2 %vm205_vm0, %v438_v46  ;;  %v1845_v46 = vld [vmem:[%s2907_s5 + $0xc0] sm:$0xff] }
  0xf8   :  { %818 = vmatpush.msra.mxu3 %v1845_v46 }
  0xff   :  { %1799 = vmatmul.msk.f32.gmra.mxu2 %vm205_vm0, %v439_v47 }
 0x107   :  { %1800 = vmatmul.msk.f32.gmra.mxu2 %vm205_vm0, %v440_v48  ;;  %v578_v48 = vld [vmem:[%s2906_s4] sm:$0xff] }
 0x10f   :  { %1801 = vmatmul.msk.f32.gmra.mxu2 %vm205_vm0, %v441_v49  ;;  %v1835_v49 = vld [vmem:[%s2906_s4 + $0x30] sm:$0xff] }
 0x117   :  { %1802 = vmatmul.msk.f32.gmra.mxu2 %vm205_vm0, %v442_v50  ;;  %v1813_v50 = vld [vmem:[%s2906_s4 + $0x18] sm:$0xff] }
 0x11f   :  { %1803 = vmatmul.msk.f32.gmra.mxu2 %vm205_vm0, %v443_v51  ;;  %v1828_v51 = vld [vmem:[%s2907_s5 + $0x98] sm:$0xff] }
 0x14a   :  { %v366_v52 = vpop.f32.mrf.mxu2  ;;  %v419_v53 = vpop.f32.mrf.mxu3 }
 0x14b   :  { %v420_v54 = vadd.f32 %v419_v53, %v366_v52  ;;  %v626_v52 = vld [vmem:[%s2907_s5 + $0x48] sm:$0xff]  ;;  %v1844_v53 = vld [vmem:[%s2907_s5 + $0xb8] sm:$0xff] }
 0x14c   :  { %819 = vmatpush.msra.mxu3 %v1844_v53 }
 0x152   :  { %v369_v56 = vpop.f32.mrf.mxu2  ;;  %v422_v57 = vpop.f32.mrf.mxu3 }
 0x153   :  { %v423_v58 = vadd.f32 %v422_v57, %v369_v56  ;;  %v1843_v56 = vld [vmem:[%s2907_s5 + $0xb0] sm:$0xff]  ;;  %v1826_v57 = vld [vmem:[%s2907_s5 + $0x88] sm:$0xff] }
 0x154   :  { %820 = vmatpush.msra.mxu3 %v1843_v56  ;;  %v1864_v56 = vld [vmem:[%s2910_s8 + $0x80] sm:$0xff] }
 0x156   :  { %821 = vmatpush.msra.mxu3 %v1842_v59  ;;  %v1863_v59 = vld [vmem:[%s2910_s8 + $0x78] sm:$0xff] }
 0x15a   :  { %v372_v63 = vpop.f32.mrf.mxu2  ;;  %v425_v0 = vpop.f32.mrf.mxu3 }
 0x15b   :  { %v426_v1 = vadd.f32 %v425_v0, %v372_v63  ;;  %v1814_v63 = vld [vmem:[%s2906_s4 + $0x20] sm:$0xff] }
 0x15c   :  { %v1825_v0 = vld [vmem:[%s2907_s5 + $0x80] sm:$0xff] }
 0x162   :  { %v375_v2 = vpop.f32.mrf.mxu2  ;;  %v428_v3 = vpop.f32.mrf.mxu3 }
 0x163   :  { %v429_v4 = vadd.f32 %v428_v3, %v375_v2  ;;  %v1824_v2 = vld [vmem:[%s2907_s5 + $0x78] sm:$0xff]  ;;  %v621_v3 = vld [vmem:[%s2907_s5 + $0x20] sm:$0xff] }
 0x16a   :  { %v378_v5 = vpop.f32.mrf.mxu2  ;;  %v431_v13 = vpop.f32.mrf.mxu3 }
 0x16b   :  { %v432_v20 = vadd.f32 %v431_v13, %v378_v5  ;;  %v620_v5 = vld [vmem:[%s2907_s5 + $0x18] sm:$0xff] }
 0x16c   :  { %v1820_v13 = vld [vmem:[%s2907_s5 + $0x58] sm:$0xff] }
 0x172   :  { %v381_v6 = vpop.f32.mrf.mxu2  ;;  %v434_v14 = vpop.f32.mrf.mxu3 }
 0x173   :  { %v435_v21 = vadd.f32 %v434_v14, %v381_v6  ;;  %v580_v6 = vld [vmem:[%s2906_s4 + $0x10] sm:$0xff]  ;;  %v618_v14 = vld [vmem:[%s2907_s5 + $0x8] sm:$0xff] }
 0x17a   :  { %v479_v7 = vpop.f32.mrf.mxu2 }
 0x17b   :  { %1804 = vmatmul.msk.f32.vlgmr.msrb.gmra.mxu3 %vm330_vm1, %v479_v7  ;;  %v619_v7 = vld [vmem:[%s2907_s5 + $0x10] sm:$0xff] }
 0x182   :  { %v482_v8 = vpop.f32.mrf.mxu2 }
 0x183   :  { %1805 = vmatmul.msk.f32.gmra.mxu3 %vm330_vm1, %v482_v8  ;;  %v1837_v8 = vld [vmem:[%s2906_s4 + $0x40] sm:$0xff] }
 0x18a   :  { %v485_v9 = vpop.f32.mrf.mxu2 }
 0x18b   :  { %1806 = vmatmul.msk.f32.gmra.mxu3 %vm330_vm1, %v485_v9  ;;  %v1815_v9 = vld [vmem:[%s2906_s4 + $0x28] sm:$0xff] }
 0x192   :  { %v488_v10 = vpop.f32.mrf.mxu2 }
 0x193   :  { %1807 = vmatmul.msk.f32.gmra.mxu3 %vm330_vm1, %v488_v10  ;;  %v1822_v10 = vld [vmem:[%s2907_s5 + $0x68] sm:$0xff] }
 0x19a   :  { %v491_v11 = vpop.f32.mrf.mxu2 }
 0x19b   :  { %1808 = vmatmul.msk.f32.gmra.mxu3 %vm330_vm1, %v491_v11  ;;  %v1821_v11 = vld [vmem:[%s2907_s5 + $0x60] sm:$0xff] }
 0x1a2   :  { %v494_v12 = vpop.f32.mrf.mxu2 }
 0x1a3   :  { %1809 = vmatmul.msk.f32.gmra.mxu3 %vm330_vm1, %v494_v12  ;;  %v1841_v12 = vld [vmem:[%s2907_s5 + $0xa0] sm:$0xff] }
 0x1a4   :  { %822 = vmatpush.msra.mxu3 %v1841_v12  ;;  %v878_v12 = vld [vmem:[%s2910_s8] sm:$0xff] }
 0x1fe   :  { %v538_v15 = vpop.f32.mrf.mxu3 }
 0x1ff   :  { %v556_v35 = vadd.f32 %v538_v15, %v420_v54  ;;  %v1827_v54 = vld [vmem:[%s2907_s5 + $0x90] sm:$0xff] }
 0x200   :  { %v1819_v15 = vld [vmem:[%s2907_s5 + $0x50] sm:$0xff] }
 0x201   :  { %v566_v42 = vadd.f32 %v1932_v24, %v556_v35 }
 0x203   :  { %v572_v47 = vmax.f32 %v566_v42, 0.0 }
 0x206   :  { %v541_v16 = vpop.f32.mrf.mxu3 }
 0x207   :  { %v557_v31 = vadd.f32 %v541_v16, %v423_v58  ;;  %v624_v58 = vld [vmem:[%s2907_s5 + $0x38] sm:$0xff]  ;;  %v617_v16 = vld [vmem:[%s2907_s5] sm:$0xff] }
 0x209   :  { %v567_v39 = vadd.f32 %v1932_v24, %v557_v31 }
 0x20b   :  { %v573_v45 = vmax.f32 %v567_v39, 0.0 }
 0x20e   :  { %v544_v17 = vpop.f32.mrf.mxu3 }
 0x20f   :  { %v558_v27 = vadd.f32 %v544_v17, %v426_v1  ;;  %v622_v1 = vld [vmem:[%s2907_s5 + $0x28] sm:$0xff] }
 0x211   :  { %v568_v36 = vadd.f32 %v1932_v24, %v558_v27 }
 0x213   :  { %v574_v43 = vmax.f32 %v568_v36, 0.0 }
 0x216   :  { %v547_v18 = vpop.f32.mrf.mxu3 }
 0x217   :  { %v559_v25 = vadd.f32 %v547_v18, %v429_v4  ;;  %v1823_v4 = vld [vmem:[%s2907_s5 + $0x70] sm:$0xff] }
 0x219   :  { %v569_v32 = vadd.f32 %v1932_v24, %v559_v25 }
 0x21b   :  { %v575_v40 = vmax.f32 %v569_v32, 0.0 }
 0x21e   :  { %v550_v19 = vpop.f32.mrf.mxu3 }
 0x21f   :  { %v560_v22 = vadd.f32 %v550_v19, %v432_v20 }
 0x221   :  { %v570_v28 = vadd.f32 %v1932_v24, %v560_v22 }
 0x223   :  { %v576_v37 = vmax.f32 %v570_v28, 0.0 }
 0x226   :  { %v553_v23 = vpop.f32.mrf.mxu3 }
 0x227   :  { %v561_v26 = vadd.f32 %v553_v23, %v435_v21 }
 0x229   :  { %v571_v29 = vadd.f32 %v1932_v24, %v561_v26 }
 0x22b   :  { %v577_v33 = vmax.f32 %v571_v29, 0.0 }
 0x22d   :  { %601 = vmatpush.msrb.mxu0 %v577_v33  ;;  %650 = vmatpush.msrb.mxu1 %v577_v33 }
 0x22e   :  { %771 = vmatpush.msra.mxu2 %v577_v33 }
 0x22f   :  { %602 = vmatpush.msrb.mxu0 %v576_v37  ;;  %651 = vmatpush.msrb.mxu1 %v576_v37 }
 0x230   :  { %772 = vmatpush.msra.mxu2 %v576_v37 }
 0x231   :  { %603 = vmatpush.msrb.mxu0 %v575_v40  ;;  %652 = vmatpush.msrb.mxu1 %v575_v40 }
 0x232   :  { %773 = vmatpush.msra.mxu2 %v575_v40  ;;  %v1933_v40 = vld [vmem:[#allocation8] ss:$0 sm:$0xff] }
 0x233   :  { %604 = vmatpush.msrb.mxu0 %v574_v43  ;;  %653 = vmatpush.msrb.mxu1 %v574_v43 }
 0x234   :  { %774 = vmatpush.msra.mxu2 %v574_v43 }
 0x235   :  { %605 = vmatpush.msrb.mxu0 %v573_v45  ;;  %654 = vmatpush.msrb.mxu1 %v573_v45 }
 0x236   :  { %775 = vmatpush.msra.mxu2 %v573_v45  ;;  %v887_v45 = vld [vmem:[%s2910_s8 + $0x48] sm:$0xff] }
 0x237   :  { %606 = vmatpush.msrb.mxu0 %v572_v47  ;;  %655 = vmatpush.msrb.mxu1 %v572_v47 }
 0x238   :  { %776 = vmatpush.msra.mxu2 %v572_v47  ;;  %1810 = vmatmul.msk.f32.vlgmr.msrb.gmra.mxu0 %vm581_vm2, %v578_v48  ;;  %v1866_v48 = vld [vmem:[%s2910_s8 + $0x90] sm:$0xff] }
 0x239   :  { %1838 = vmatmul.msk.f32.vlgmr.msra.gmra.mxu2 %vm581_vm2, %v1835_v49  ;;  %1816 = vmatmul.msk.f32.vlgmr.msrb.gmra.mxu1 %vm581_vm2, %v1813_v50  ;;  %v886_v49 = vld [vmem:[%s2910_s8 + $0x40] sm:$0xff] }
 0x23a   :  { %693 = vmatpush.msra.mxu0 %v1828_v51  ;;  %728 = vmatpush.msra.mxu1 %v626_v52  ;;  %v1865_v51 = vld [vmem:[%s2910_s8 + $0x88] sm:$0xff]  ;;  %v885_v52 = vld [vmem:[%s2910_s8 + $0x38] sm:$0xff] }
 0x23b   :  { %943 = vmatpush.msrb.mxu2 %v1867_v44  ;;  %972 = vmatpush.msrb.mxu3 %v887_v45  ;;  %v1146_v44 = vld [vmem:[#allocation13 + $0xa0] sm:$0xff] }
 0x23c   :  { %694 = vmatpush.msra.mxu0 %v1827_v54  ;;  %729 = vmatpush.msra.mxu1 %v625_v55  ;;  %v846_v54 = vld [vmem:[#allocation10] sm:$0xff]  ;;  %v889_v55 = vld [vmem:[#allocation10 + $0x10] sm:$0xff] }
 0x23d   :  { %944 = vmatpush.msrb.mxu2 %v1866_v48  ;;  %973 = vmatpush.msrb.mxu3 %v886_v49  ;;  %v1100_v45 = vld [vmem:[#allocation13] sm:$0xff] }
 0x23e   :  { %695 = vmatpush.msra.mxu0 %v1826_v57  ;;  %730 = vmatpush.msra.mxu1 %v624_v58  ;;  %v884_v57 = vld [vmem:[%s2910_s8 + $0x30] sm:$0xff]  ;;  %v1883_v58 = vld [vmem:[%s2910_s8 + $0xe8] sm:$0xff] }
 0x23f   :  { %945 = vmatpush.msrb.mxu2 %v1865_v51  ;;  %974 = vmatpush.msrb.mxu3 %v885_v52 }
 0x240   :  { %1811 = vmatmul.msk.f32.gmra.mxu0 %vm581_vm2, %v579_v60  ;;  %731 = vmatpush.msra.mxu1 %v623_v61  ;;  %v883_v60 = vld [vmem:[%s2910_s8 + $0x28] sm:$0xff]  ;;  %v847_v61 = vld [vmem:[#allocation10 + $0x8] sm:$0xf] }
 0x241   :  { %1839 = vmatmul.msk.f32.gmra.mxu2 %vm581_vm2, %v1836_v62  ;;  %1817 = vmatmul.msk.f32.gmra.mxu1 %vm581_vm2, %v1814_v63  ;;  %v890_v62 = vld [vmem:[#allocation10 + $0x18] sm:$0xf]  ;;  %v990_v63 = vld [vmem:[#allocation10 + $0x20] sm:$0xff] }
 0x242   :  { %696 = vmatpush.msra.mxu0 %v1825_v0  ;;  %732 = vmatpush.msra.mxu1 %v622_v1  ;;  %v991_v0 = vld [vmem:[#allocation10 + $0x28] sm:$0xf] }
 0x243   :  { %946 = vmatpush.msrb.mxu2 %v1864_v56  ;;  %975 = vmatpush.msrb.mxu3 %v884_v57  ;;  %v1862_v1 = vld [vmem:[%s2910_s8 + $0x70] sm:$0xff] }
 0x244   :  { %697 = vmatpush.msra.mxu0 %v1824_v2  ;;  %733 = vmatpush.msra.mxu1 %v621_v3  ;;  %v882_v2 = vld [vmem:[%s2910_s8 + $0x20] sm:$0xff]  ;;  %v1861_v3 = vld [vmem:[%s2910_s8 + $0x68] sm:$0xff] }
 0x245   :  { %947 = vmatpush.msrb.mxu2 %v1863_v59  ;;  %976 = vmatpush.msrb.mxu3 %v883_v60 }
 0x246   :  { %698 = vmatpush.msra.mxu0 %v1823_v4  ;;  %734 = vmatpush.msra.mxu1 %v620_v5  ;;  %v881_v4 = vld [vmem:[%s2910_s8 + $0x18] sm:$0xff]  ;;  %v1860_v5 = vld [vmem:[%s2910_s8 + $0x60] sm:$0xff] }
 0x247   :  { %948 = vmatpush.msrb.mxu2 %v1862_v1  ;;  %977 = vmatpush.msrb.mxu3 %v882_v2  ;;  %v1161_v1 = vld [vmem:[#allocation13 + $0x118] sm:$0xff]  ;;  %v1159_v2 = vld [vmem:[#allocation13 + $0x108] sm:$0xff] }
 0x248   :  { %1812 = vmatmul.msk.f32.gmra.mxu0 %vm581_vm2, %v580_v6  ;;  %735 = vmatpush.msra.mxu1 %v619_v7  ;;  %v880_v6 = vld [vmem:[%s2910_s8 + $0x10] sm:$0xff]  ;;  %v1859_v7 = vld [vmem:[%s2910_s8 + $0x58] sm:$0xff] }
 0x249   :  { %1840 = vmatmul.msk.f32.gmra.mxu2 %vm581_vm2, %v1837_v8  ;;  %1818 = vmatmul.msk.f32.gmra.mxu1 %vm581_vm2, %v1815_v9  ;;  %v879_v8 = vld [vmem:[%s2910_s8 + $0x8] sm:$0xff]  ;;  %v1882_v9 = vld [vmem:[%s2910_s8 + $0xe0] sm:$0xff] }
 0x24a   :  { %699 = vmatpush.msra.mxu0 %v1822_v10  ;;  %736 = vmatpush.msra.mxu1 %v618_v14  ;;  %v1881_v10 = vld [vmem:[%s2910_s8 + $0xd8] sm:$0xff]  ;;  %v1879_v14 = vld [vmem:[%s2910_s8 + $0xc8] sm:$0xff] }
 0x24b   :  { %949 = vmatpush.msrb.mxu2 %v1861_v3  ;;  %978 = vmatpush.msrb.mxu3 %v881_v4  ;;  %v1157_v3 = vld [vmem:[#allocation13 + $0xf8] sm:$0xff]  ;;  %v1155_v4 = vld [vmem:[#allocation13 + $0xe8] sm:$0xff] }
 0x24c   :  { %700 = vmatpush.msra.mxu0 %v1821_v11  ;;  %737 = vmatpush.msra.mxu1 %v617_v16  ;;  %v1858_v11 = vld [vmem:[%s2910_s8 + $0x50] sm:$0xff]  ;;  %v1877_v16 = vld [vmem:[%s2910_s8 + $0xb8] sm:$0xff] }
 0x24d   :  { %950 = vmatpush.msrb.mxu2 %v1860_v5  ;;  %979 = vmatpush.msrb.mxu3 %v880_v6  ;;  %v1153_v5 = vld [vmem:[#allocation13 + $0xd8] sm:$0xff]  ;;  %v1151_v6 = vld [vmem:[#allocation13 + $0xc8] sm:$0xff] }
 0x24e   :  { %701 = vmatpush.msra.mxu0 %v1820_v13  ;;  %v1880_v13 = vld [vmem:[%s2910_s8 + $0xd0] sm:$0xff] }
 0x24f   :  { %951 = vmatpush.msrb.mxu2 %v1859_v7  ;;  %980 = vmatpush.msrb.mxu3 %v879_v8  ;;  %v1149_v7 = vld [vmem:[#allocation13 + $0xb8] sm:$0xff]  ;;  %v1147_v8 = vld [vmem:[#allocation13 + $0xa8] sm:$0xff] }
 0x250   :  { %702 = vmatpush.msra.mxu0 %v1819_v15  ;;  %v1878_v15 = vld [vmem:[%s2910_s8 + $0xc0] sm:$0xff] }
 0x251   :  { %952 = vmatpush.msrb.mxu2 %v1858_v11  ;;  %981 = vmatpush.msrb.mxu3 %v878_v12  ;;  %v1292_v11 = vld [vmem:[#allocation13 + $0x1b0] sm:$0xff]  ;;  %v1290_v12 = vld [vmem:[#allocation13 + $0x1a0] sm:$0xff] }
 0x2b5   :  { %v608_v17 = vpop.f32.mrf.mxu0 }
 0x2b6   :  { %v657_v18 = vpop.f32.mrf.mxu1  ;;  %1832 = vmatmul.msk.f32.vlgmr.msra.gmra.mxu1 %vm677_vm3, %v608_v17  ;;  %v1876_v17 = vld [vmem:[%s2910_s8 + $0xb0] sm:$0xff] }
 0x2b7   :  { %1829 = vmatmul.msk.f32.vlgmr.msra.gmra.mxu0 %vm677_vm3, %v657_v18  ;;  %v1875_v18 = vld [vmem:[%s2910_s8 + $0xa8] sm:$0xff] }
 0x2bc   :  { %v778_v19 = vpop.f32.mrf.mxu2 }
 0x2bd   :  { %1851 = vmatmul.msk.f32.vlgmr.msra.gmra.mxu3 %vm677_vm3, %v778_v19  ;;  %v611_v20 = vpop.f32.mrf.mxu0  ;;  %v1874_v19 = vld [vmem:[%s2910_s8 + $0xa0] sm:$0xff] }
 0x2be   :  { %v660_v21 = vpop.f32.mrf.mxu1  ;;  %1833 = vmatmul.msk.f32.gmra.mxu1 %vm677_vm3, %v611_v20 }
 0x2bf   :  { %1830 = vmatmul.msk.f32.gmra.mxu0 %vm677_vm3, %v660_v21 }
 0x2c4   :  { %v781_v22 = vpop.f32.mrf.mxu2 }
 0x2c5   :  { %1852 = vmatmul.msk.f32.gmra.mxu3 %vm677_vm3, %v781_v22  ;;  %v614_v23 = vpop.f32.mrf.mxu0 }
 0x2c6   :  { %v663_v24 = vpop.f32.mrf.mxu1  ;;  %1834 = vmatmul.msk.f32.gmra.mxu1 %vm677_vm3, %v614_v23 }
 0x2c7   :  { %1831 = vmatmul.msk.f32.gmra.mxu0 %vm677_vm3, %v663_v24 }
 0x2cc   :  { %v784_v25 = vpop.f32.mrf.mxu2 }
 0x2cd   :  { %1853 = vmatmul.msk.f32.gmra.mxu3 %vm677_vm3, %v784_v25 }
 0x333   :  { %v739_v26 = vpop.f32.mrf.mxu1 }
 0x334   :  { %v704_v27 = vpop.f32.mrf.mxu0 }
 0x335   :  { %v740_v35 = vadd.f32 %v739_v26, %v704_v27  ;;  %v1164_v26 = vld [vmem:[#allocation13 + $0x130] sm:$0xff] }
 0x336   :  { %v1118_v27 = vld [vmem:[#allocation13 + $0x90] sm:$0xff] }
 0x337   :  { %1218 = vmatpush.msra.mxu2 %v1118_v27  ;;  %v1280_v27 = vld [vmem:[#allocation13 + $0x150] sm:$0xff] }
 0x33b   :  { %v742_v28 = vpop.f32.mrf.mxu1 }
 0x33c   :  { %v707_v30 = vpop.f32.mrf.mxu0 }
 0x33d   :  { %v743_v34 = vadd.f32 %v742_v28, %v707_v30  ;;  %v1162_v28 = vld [vmem:[#allocation13 + $0x120] sm:$0xff]  ;;  %v1160_v30 = vld [vmem:[#allocation13 + $0x110] sm:$0xff] }
 0x340   :  { %v824_v29 = vpop.f32.mrf.mxu3 }
 0x341   :  { %v833_v39 = vadd.f32 %v824_v29, %v740_v35  ;;  %v1116_v29 = vld [vmem:[#allocation13 + $0x80] sm:$0xff]  ;;  %v1110_v35 = vld [vmem:[#allocation13 + $0x50] sm:$0xff] }
 0x342   :  { %1219 = vmatpush.msra.mxu2 %v1116_v29  ;;  %v1387_v29 = vld [vmem:[#allocation13 + $0x270] sm:$0xff] }
 0x343   :  { %v745_v33 = vpop.f32.mrf.mxu1  ;;  %v840_v46 = vadd.f32 %v1933_v40, %v833_v39  ;;  %v1106_v39 = vld [vmem:[#allocation13 + $0x30] sm:$0xff] }
 0x344   :  { %v710_v32 = vpop.f32.mrf.mxu0 }
 0x345   :  { %v746_v36 = vadd.f32 %v745_v33, %v710_v32  ;;  %v843_v53 = vmax.f32 %v840_v46, 0.0  ;;  %v1158_v32 = vld [vmem:[#allocation13 + $0x100] sm:$0xff] }
 0x346   :  { %v1112_v33 = vld [vmem:[#allocation13 + $0x60] sm:$0xff] }
 0x348   :  { %v827_v31 = vpop.f32.mrf.mxu3 }
 0x349   :  { %v834_v37 = vadd.f32 %v827_v31, %v743_v34  ;;  %v1114_v31 = vld [vmem:[#allocation13 + $0x70] sm:$0xff] }
 0x34a   :  { %1220 = vmatpush.msra.mxu2 %v1114_v31  ;;  %v1156_v34 = vld [vmem:[#allocation13 + $0xf0] sm:$0xff] }
 0x34b   :  { %v841_v42 = vadd.f32 %v1933_v40, %v834_v37  ;;  %v1108_v37 = vld [vmem:[#allocation13 + $0x40] sm:$0xff]  ;;  %v1383_v31 = vld [vmem:[#allocation13 + $0x250] sm:$0xff] }
 0x34c   :  { %1221 = vmatpush.msra.mxu2 %v1112_v33  ;;  %v1379_v33 = vld [vmem:[#allocation13 + $0x230] sm:$0xff] }
 0x34d   :  { %v844_v50 = vmax.f32 %v841_v42, 0.0  ;;  %v1148_v42 = vld [vmem:[#allocation13 + $0xb0] sm:$0xff] }
 0x34e   :  { %1222 = vmatpush.msra.mxu2 %v1110_v35 }
 0x350   :  { %v830_v38 = vpop.f32.mrf.mxu3  ;;  %1223 = vmatpush.msra.mxu2 %v1108_v37  ;;  %v1384_v37 = vld [vmem:[#allocation13 + $0x258] sm:$0xff] }
 0x351   :  { %v835_v41 = vadd.f32 %v830_v38, %v746_v36  ;;  %v1154_v36 = vld [vmem:[#allocation13 + $0xe0] sm:$0xff]  ;;  %v1152_v38 = vld [vmem:[#allocation13 + $0xd0] sm:$0xff] }
 0x352   :  { %1224 = vmatpush.msra.mxu2 %v1106_v39 }
 0x353   :  { %v842_v43 = vadd.f32 %v1933_v40, %v835_v41  ;;  %v1150_v40 = vld [vmem:[#allocation13 + $0xc0] sm:$0xff] }
 0x354   :  { %v1104_v41 = vld [vmem:[#allocation13 + $0x20] sm:$0xff] }
 0x355   :  { %v845_v47 = vmax.f32 %v842_v43, 0.0  ;;  %1225 = vmatpush.msra.mxu2 %v1104_v41  ;;  %v1102_v43 = vld [vmem:[#allocation13 + $0x10] sm:$0xff]  ;;  %v1295_v41 = vld [vmem:[#allocation13 + $0x1c8] sm:$0xff] }
 0x357   :  { %868 = vmatpush.msrb.mxu0 %v845_v47  ;;  %910 = vmatpush.msrb.mxu1 %v845_v47 }
 0x358   :  { %1226 = vmatpush.msra.mxu2 %v1102_v43  ;;  %v1293_v43 = vld [vmem:[#allocation13 + $0x1b8] sm:$0xff] }
 0x359   :  { %869 = vmatpush.msrb.mxu0 %v844_v50  ;;  %911 = vmatpush.msrb.mxu1 %v844_v50 }
 0x35a   :  { %1227 = vmatpush.msra.mxu2 %v1100_v45  ;;  %v1291_v45 = vld [vmem:[#allocation13 + $0x1a8] sm:$0xff] }
 0x35b   :  { %870 = vmatpush.msrb.mxu0 %v843_v53  ;;  %912 = vmatpush.msrb.mxu1 %v843_v53 }
 0x35c   :  { %1854 = vmatmul.msk.f32.vlgmr.msrb.gmra.mxu0 %vm848_vm4, %v846_v54  ;;  %1856 = vmatmul.msk.f32.vlgmr.msrb.gmra.mxu1 %vm848_vm4, %v889_v55 }
 0x35d   :  { %1011 = vmatpush.msra.mxu0 %v845_v47  ;;  %1044 = vmatpush.msra.mxu1 %v1883_v58 }
 0x35f   :  { %1012 = vmatpush.msra.mxu0 %v844_v50  ;;  %1045 = vmatpush.msra.mxu1 %v1882_v9  ;;  %v1296_v9 = vld [vmem:[#allocation13 + $0x1d0] sm:$0xff] }
 0x361   :  { %1013 = vmatpush.msra.mxu0 %v843_v53  ;;  %1046 = vmatpush.msra.mxu1 %v1881_v10  ;;  %v1934_v53 = vld [vmem:[#allocation11] ss:$0 sm:$0xff]  ;;  %v1294_v10 = vld [vmem:[#allocation13 + $0x1c0] sm:$0xff] }
 0x363   :  { %1047 = vmatpush.msra.mxu1 %v1880_v13  ;;  %1175 = vmatpush.msrb.mxu0 %v1164_v26  ;;  %v1288_v13 = vld [vmem:[#allocation13 + $0x190] sm:$0xff]  ;;  %v1101_v26 = vld [vmem:[#allocation13 + $0x8] sm:$0xff] }
 0x364   :  { %1855 = vmatmul.msk.f32.gmra.mxu0 %vm848_vm4, %v847_v61  ;;  %1857 = vmatmul.msk.f32.gmra.mxu1 %vm848_vm4, %v890_v62  ;;  %v1071_v61 = vld [vmem:[%s2912_s10] sm:$0x3]  ;;  %v1888_v62 = vld [vmem:[%s2912_s10 + $0x2] sm:$0x3] }
 0x365   :  { %1048 = vmatpush.msra.mxu1 %v1879_v14  ;;  %1176 = vmatpush.msrb.mxu0 %v1162_v28  ;;  %v1286_v14 = vld [vmem:[#allocation13 + $0x180] sm:$0xff] }
 0x366   :  { %v1278_v28 = vld [vmem:[#allocation13 + $0x140] sm:$0xff] }
 0x367   :  { %1049 = vmatpush.msra.mxu1 %v1878_v15  ;;  %1177 = vmatpush.msrb.mxu0 %v1160_v30  ;;  %v1119_v15 = vld [vmem:[#allocation13 + $0x98] sm:$0xff]  ;;  %v1385_v30 = vld [vmem:[#allocation13 + $0x260] sm:$0xff] }
 0x369   :  { %1050 = vmatpush.msra.mxu1 %v1877_v16  ;;  %1178 = vmatpush.msrb.mxu0 %v1158_v32  ;;  %v1117_v16 = vld [vmem:[#allocation13 + $0x88] sm:$0xff]  ;;  %v1381_v32 = vld [vmem:[#allocation13 + $0x240] sm:$0xff] }
 0x36b   :  { %1051 = vmatpush.msra.mxu1 %v1876_v17  ;;  %1179 = vmatpush.msrb.mxu0 %v1156_v34  ;;  %v1115_v17 = vld [vmem:[#allocation13 + $0x78] sm:$0xff] }
 0x36c   :  { %1872 = vmatmul.msk.f32.vlgmr.msra.gmra.mxu0 %vm848_vm4, %v990_v63  ;;  %v1165_v63 = vld [vmem:[#allocation13 + $0x138] sm:$0xff] }
 0x36d   :  { %1052 = vmatpush.msra.mxu1 %v1875_v18  ;;  %1180 = vmatpush.msrb.mxu0 %v1154_v36  ;;  %v1113_v18 = vld [vmem:[#allocation13 + $0x68] sm:$0xff]  ;;  %v1388_v34 = vld [vmem:[#allocation13 + $0x278] sm:$0xff] }
 0x36e   :  { %v1386_v36 = vld [vmem:[#allocation13 + $0x268] sm:$0xff] }
 0x36f   :  { %1053 = vmatpush.msra.mxu1 %v1874_v19  ;;  %1181 = vmatpush.msrb.mxu0 %v1152_v38  ;;  %v1111_v19 = vld [vmem:[#allocation13 + $0x58] sm:$0xff] }
 0x370   :  { %v1297_v38 = vld [vmem:[#allocation13 + $0x1d8] sm:$0xff] }
 0x371   :  { %1182 = vmatpush.msrb.mxu0 %v1150_v40  ;;  %v1900_v40 = vld [vmem:[%s2912_s10 + $0x6] sm:$0x3] }
 0x373   :  { %1183 = vmatpush.msrb.mxu0 %v1148_v42  ;;  %v1382_v42 = vld [vmem:[#allocation13 + $0x248] sm:$0xff] }
 0x374   :  { %1873 = vmatmul.msk.f32.gmra.mxu0 %vm848_vm4, %v991_v0  ;;  %v1163_v0 = vld [vmem:[#allocation13 + $0x128] sm:$0xff] }
 0x375   :  { %1184 = vmatpush.msrb.mxu0 %v1146_v44  ;;  %v1380_v44 = vld [vmem:[#allocation13 + $0x238] sm:$0xff] }
 0x3d9   :  { %v872_v20 = vpop.f32.mrf.mxu0  ;;  %v914_v21 = vpop.f32.mrf.mxu1 }
 0x3da   :  { %1868 = vmatmul.msk.f32.vlgmr.msrb.gmra.mxu2 %vm677_vm3, %v914_v21  ;;  %1870 = vmatmul.msk.f32.vlgmr.msrb.gmra.mxu3 %vm677_vm3, %v872_v20  ;;  %v1109_v20 = vld [vmem:[#allocation13 + $0x48] sm:$0xff]  ;;  %v1107_v21 = vld [vmem:[#allocation13 + $0x38] sm:$0xff] }
 0x3e1   :  { %v875_v22 = vpop.f32.mrf.mxu0  ;;  %v917_v23 = vpop.f32.mrf.mxu1 }
 0x3e2   :  { %1869 = vmatmul.msk.f32.gmra.mxu2 %vm677_vm3, %v917_v23  ;;  %1871 = vmatmul.msk.f32.gmra.mxu3 %vm677_vm3, %v875_v22  ;;  %v1105_v22 = vld [vmem:[#allocation13 + $0x28] sm:$0xff]  ;;  %v1103_v23 = vld [vmem:[#allocation13 + $0x18] sm:$0xff] }
 0x3e9   :  { %v1015_v24 = vpop.f32.mrf.mxu0 }
 0x3ea   :  { %1884 = vmatmul.msk.f32.vlgmr.msra.gmra.mxu1 %vm677_vm3, %v1015_v24  ;;  %v1284_v24 = vld [vmem:[#allocation13 + $0x170] sm:$0xff] }
 0x3f1   :  { %v1018_v25 = vpop.f32.mrf.mxu0 }
 0x3f2   :  { %1885 = vmatmul.msk.f32.gmra.mxu1 %vm677_vm3, %v1018_v25  ;;  %v1282_v25 = vld [vmem:[#allocation13 + $0x160] sm:$0xff] }
 0x45d   :  { %v954_v46 = vpop.f32.mrf.mxu2  ;;  %v983_v47 = vpop.f32.mrf.mxu3 }
 0x45e   :  { %v984_v51 = vadd.f32 %v983_v47, %v954_v46  ;;  %v1895_v46 = vld [vmem:[%s2912_s10 + $0x4] sm:$0x3]  ;;  %v1289_v47 = vld [vmem:[#allocation13 + $0x198] sm:$0xff] }
 0x465   :  { %v957_v49 = vpop.f32.mrf.mxu2  ;;  %v986_v50 = vpop.f32.mrf.mxu3 }
 0x466   :  { %v987_v54 = vadd.f32 %v986_v50, %v957_v49  ;;  %v1377_v49 = vld [vmem:[#allocation13 + $0x220] sm:$0xff]  ;;  %v1378_v50 = vld [vmem:[#allocation13 + $0x228] sm:$0xff] }
 0x467   :  { %v1055_v48 = vpop.f32.mrf.mxu1 }
 0x468   :  { %v1061_v52 = vadd.f32 %v1055_v48, %v984_v51  ;;  %v1287_v48 = vld [vmem:[#allocation13 + $0x188] sm:$0xff]  ;;  %v1285_v51 = vld [vmem:[#allocation13 + $0x178] sm:$0xff] }
 0x46a   :  { %v1067_v57 = vadd.f32 %v1934_v53, %v1061_v52  ;;  %v1375_v52 = vld [vmem:[#allocation13 + $0x210] sm:$0xff] }
 0x46c   :  { %v2690_v60 = vmax.f32 %v1067_v57, 0.0  ;;  %v1281_v57 = vld [vmem:[#allocation13 + $0x158] sm:$0xff] }
 0x46f   :  { %v1058_v55 = vpop.f32.mrf.mxu1 }
 0x470   :  { %v1062_v56 = vadd.f32 %v1058_v55, %v987_v54  ;;  %v1283_v54 = vld [vmem:[#allocation13 + $0x168] sm:$0xff]  ;;  %v1373_v55 = vld [vmem:[#allocation13 + $0x200] sm:$0xff] }
 0x472   :  { %v1068_v58 = vadd.f32 %v1934_v53, %v1062_v56  ;;  %v1376_v53 = vld [vmem:[#allocation13 + $0x218] sm:$0xff]  ;;  %v1374_v56 = vld [vmem:[#allocation13 + $0x208] sm:$0xff] }
 0x474   :  { %v2688_v59 = vmax.f32 %v1068_v58, 0.0  ;;  %v1371_v58 = vld [vmem:[#allocation13 + $0x1f0] sm:$0xff] }
 0x476   :  { %1886 = vmatpush.msk.msrb.mxu1 %vm1076_vm5, %v2688_v59  ;;  %1889 = vmatpush.msk.msra.mxu3 %vm1076_vm5, %v2688_v59 }
 0x477   :  { %1896 = vmatpush.msk.msra.mxu0 %vm1076_vm5, %v2688_v59  ;;  %1901 = vmatpush.msk.msrb.mxu2 %vm1076_vm5, %v2688_v59 }
 0x478   :  { %1095 = vmatpush.msrb.mxu1 %v2690_v60  ;;  %1140 = vmatpush.msra.mxu3 %v2690_v60 }
 0x479   :  { %1887 = vmatmul.msk.f32.vlgmr.msrb.gmra.mxu1 %vm1072_vm6, %v1071_v61  ;;  %1890 = vmatmul.msk.f32.vlgmr.msra.gmra.mxu3 %vm1072_vm6, %v1888_v62  ;;  %v1372_v61 = vld [vmem:[#allocation13 + $0x1f8] sm:$0xff]  ;;  %v1279_v62 = vld [vmem:[#allocation13 + $0x148] sm:$0xff] }
 0x47a   :  { %1272 = vmatpush.msra.mxu0 %v2690_v60  ;;  %1363 = vmatpush.msrb.mxu2 %v2690_v60 }
 0x47b   :  { %1195 = vmatpush.msra.mxu1 %v1165_v63  ;;  %1238 = vmatpush.msrb.mxu3 %v1119_v15  ;;  %v1369_v63 = vld [vmem:[#allocation13 + $0x1e0] sm:$0xff] }
 0x47d   :  { %1196 = vmatpush.msra.mxu1 %v1163_v0  ;;  %1239 = vmatpush.msrb.mxu3 %v1117_v16  ;;  %v1370_v0 = vld [vmem:[#allocation13 + $0x1e8] sm:$0xff] }
 0x47f   :  { %1197 = vmatpush.msra.mxu1 %v1161_v1  ;;  %1240 = vmatpush.msrb.mxu3 %v1115_v17  ;;  %v1478_v1 = vld [vmem:[#allocation13 + $0x310] sm:$0xff]  ;;  %v1905_v17 = vld [vmem:[%s2912_s10 + $0x8] sm:$0x3] }
 0x481   :  { %1198 = vmatpush.msra.mxu1 %v1159_v2  ;;  %1241 = vmatpush.msrb.mxu3 %v1113_v18  ;;  %v1479_v2 = vld [vmem:[#allocation13 + $0x318] sm:$0xff] }
 0x482   :  { %v1570_v18 = vld [vmem:[#allocation13 + $0x3b8] sm:$0xff] }
 0x483   :  { %1199 = vmatpush.msra.mxu1 %v1157_v3  ;;  %1242 = vmatpush.msrb.mxu3 %v1111_v19  ;;  %v1476_v3 = vld [vmem:[#allocation13 + $0x300] sm:$0xff]  ;;  %v1910_v19 = vld [vmem:[%s2912_s10 + $0xa] sm:$0x3] }
 0x485   :  { %1200 = vmatpush.msra.mxu1 %v1155_v4  ;;  %1243 = vmatpush.msrb.mxu3 %v1109_v20  ;;  %v1477_v4 = vld [vmem:[#allocation13 + $0x308] sm:$0xff]  ;;  %v1468_v20 = vld [vmem:[#allocation13 + $0x2c0] sm:$0xff] }
 0x487   :  { %1201 = vmatpush.msra.mxu1 %v1153_v5  ;;  %1244 = vmatpush.msrb.mxu3 %v1107_v21  ;;  %v1474_v5 = vld [vmem:[#allocation13 + $0x2f0] sm:$0xff]  ;;  %v1469_v21 = vld [vmem:[#allocation13 + $0x2c8] sm:$0xff] }
 0x489   :  { %1202 = vmatpush.msra.mxu1 %v1151_v6  ;;  %1245 = vmatpush.msrb.mxu3 %v1105_v22  ;;  %v1475_v6 = vld [vmem:[#allocation13 + $0x2f8] sm:$0xff]  ;;  %v1567_v22 = vld [vmem:[#allocation13 + $0x3a0] sm:$0xff] }
 0x48b   :  { %1203 = vmatpush.msra.mxu1 %v1149_v7  ;;  %1246 = vmatpush.msrb.mxu3 %v1103_v23  ;;  %v1569_v7 = vld [vmem:[#allocation13 + $0x3b0] sm:$0xff]  ;;  %v1467_v23 = vld [vmem:[#allocation13 + $0x2b8] sm:$0xff] }
 0x48d   :  { %1204 = vmatpush.msra.mxu1 %v1147_v8  ;;  %1247 = vmatpush.msrb.mxu3 %v1101_v26  ;;  %v1472_v8 = vld [vmem:[#allocation13 + $0x2e0] sm:$0xff] }
 0x48e   :  { %v1464_v26 = vld [vmem:[#allocation13 + $0x2a0] sm:$0xff] }
 0x48f   :  { %1307 = vmatpush.msrb.mxu1 %v1296_v9  ;;  %1398 = vmatpush.msra.mxu3 %v1387_v29  ;;  %v1473_v9 = vld [vmem:[#allocation13 + $0x2e8] sm:$0xff] }
 0x490   :  { %v1564_v29 = vld [vmem:[#allocation13 + $0x388] sm:$0xff] }
 0x491   :  { %1308 = vmatpush.msrb.mxu1 %v1294_v10  ;;  %1399 = vmatpush.msra.mxu3 %v1385_v30  ;;  %v1470_v10 = vld [vmem:[#allocation13 + $0x2d0] sm:$0xff] }
 0x492   :  { %v1462_v30 = vld [vmem:[#allocation13 + $0x290] sm:$0xff] }
 0x493   :  { %1309 = vmatpush.msrb.mxu1 %v1292_v11  ;;  %1400 = vmatpush.msra.mxu3 %v1383_v31  ;;  %v1471_v11 = vld [vmem:[#allocation13 + $0x2d8] sm:$0xff] }
 0x494   :  { %v1463_v31 = vld [vmem:[#allocation13 + $0x298] sm:$0xff] }
 0x495   :  { %1310 = vmatpush.msrb.mxu1 %v1290_v12  ;;  %1401 = vmatpush.msra.mxu3 %v1381_v32  ;;  %v1561_v32 = vld [vmem:[#allocation13 + $0x370] sm:$0xff] }
 0x497   :  { %1311 = vmatpush.msrb.mxu1 %v1288_v13  ;;  %1402 = vmatpush.msra.mxu3 %v1379_v33  ;;  %v1562_v33 = vld [vmem:[#allocation13 + $0x378] sm:$0xff] }
 0x499   :  { %1312 = vmatpush.msrb.mxu1 %v1286_v14  ;;  %1403 = vmatpush.msra.mxu3 %v1377_v49  ;;  %v1653_v49 = vld [vmem:[%s2915_s13 + $0xe8] sm:$0xff] }
 0x49b   :  { %1313 = vmatpush.msrb.mxu1 %v1284_v24  ;;  %1404 = vmatpush.msra.mxu3 %v1375_v52  ;;  %v1565_v24 = vld [vmem:[#allocation13 + $0x390] sm:$0xff] }
 0x49c   :  { %v1637_v52 = vld [vmem:[%s2915_s13 + $0x68] sm:$0xff] }
 0x49d   :  { %1314 = vmatpush.msrb.mxu1 %v1282_v25  ;;  %1405 = vmatpush.msra.mxu3 %v1373_v55  ;;  %v1566_v25 = vld [vmem:[#allocation13 + $0x398] sm:$0xff] }
 0x49f   :  { %1315 = vmatpush.msrb.mxu1 %v1280_v27  ;;  %1406 = vmatpush.msra.mxu3 %v1371_v58  ;;  %v1465_v27 = vld [vmem:[#allocation13 + $0x2a8] sm:$0xff] }
 0x4a0   :  { %v1649_v58 = vld [vmem:[%s2915_s13 + $0xc8] sm:$0xff] }
 0x4a1   :  { %1316 = vmatpush.msrb.mxu1 %v1278_v28  ;;  %1407 = vmatpush.msra.mxu3 %v1369_v63  ;;  %v1563_v28 = vld [vmem:[#allocation13 + $0x380] sm:$0xff] }
 0x4a2   :  { %v1647_v63 = vld [vmem:[%s2915_s13 + $0xb8] sm:$0xff] }
 0x4f6   :  { %v1097_v35 = vpop.f32.mrf.mxu1 }
 0x4f7   :  { %1893 = vmatmul.msk.f32.vlgmr.msra.gmra.mxu2 %vm677_vm3, %v1097_v35  ;;  %1894 = vmatmul.msk.f32.vlgmr.msrb.gmra.mxu3 %vm677_vm3, %v1097_v35  ;;  %v1461_v35 = vld [vmem:[#allocation13 + $0x288] sm:$0xff] }
 0x4f8   :  { %1418 = vmatpush.msra.mxu2 %v1388_v34  ;;  %1509 = vmatpush.msrb.mxu3 %v1479_v2  ;;  %v1460_v34 = vld [vmem:[#allocation13 + $0x280] sm:$0xff] }
 0x4fa   :  { %1419 = vmatpush.msra.mxu2 %v1386_v36  ;;  %1510 = vmatpush.msrb.mxu3 %v1477_v4  ;;  %v1559_v36 = vld [vmem:[#allocation13 + $0x360] sm:$0xff]  ;;  %v1633_v4 = vld [vmem:[%s2915_s13 + $0x48] sm:$0xff] }
 0x4fc   :  { %v1142_v39 = vpop.f32.mrf.mxu3  ;;  %1420 = vmatpush.msra.mxu2 %v1384_v37  ;;  %1511 = vmatpush.msrb.mxu3 %v1475_v6  ;;  %v1560_v37 = vld [vmem:[#allocation13 + $0x368] sm:$0xff] }
 0x4fd   :  { %1891 = vmatmul.msk.f32.vlgmr.msrb.gmra.mxu0 %vm677_vm3, %v1142_v39  ;;  %1892 = vmatmul.msk.f32.vlgmr.msra.gmra.mxu1 %vm677_vm3, %v1142_v39  ;;  %v1558_v39 = vld [vmem:[#allocation13 + $0x358] sm:$0xff]  ;;  %v1632_v6 = vld [vmem:[%s2915_s13 + $0x40] sm:$0xff] }
 0x4fe   :  { %1906 = vmatpush.msk.msra.mxu1 %vm1076_vm5, %v2688_v59  ;;  %1327 = vmatpush.msrb.mxu0 %v1297_v38  ;;  %v1557_v38 = vld [vmem:[#allocation13 + $0x350] sm:$0xff] }
 0x4ff   :  { %1902 = vmatmul.msk.f32.vlgmr.msrb.gmra.mxu2 %vm1072_vm6, %v1900_v40  ;;  %1512 = vmatpush.msrb.mxu3 %v1473_v9  ;;  %v1555_v40 = vld [vmem:[#allocation13 + $0x340] sm:$0xff] }
 0x500   :  { %1454 = vmatpush.msra.mxu1 %v2690_v60  ;;  %1328 = vmatpush.msrb.mxu0 %v1295_v41  ;;  %v1556_v41 = vld [vmem:[#allocation13 + $0x348] sm:$0xff] }
 0x501   :  { %1421 = vmatpush.msra.mxu2 %v1382_v42  ;;  %1513 = vmatpush.msrb.mxu3 %v1471_v11  ;;  %v1553_v42 = vld [vmem:[#allocation13 + $0x330] sm:$0xff]  ;;  %v1644_v9 = vld [vmem:[%s2915_s13 + $0xa0] sm:$0xff]  ;;  %v1643_v11 = vld [vmem:[%s2915_s13 + $0x98] sm:$0xff] }
 0x502   :  { %1329 = vmatpush.msrb.mxu0 %v1293_v43  ;;  %v1554_v43 = vld [vmem:[#allocation13 + $0x338] sm:$0xff] }
 0x503   :  { %1422 = vmatpush.msra.mxu2 %v1380_v44  ;;  %1514 = vmatpush.msrb.mxu3 %v1469_v21  ;;  %v1551_v44 = vld [vmem:[#allocation13 + $0x320] sm:$0xff]  ;;  %v1722_v21 = vld [vmem:[%s2917_s15 + $0x70] sm:$0xff] }
 0x504   :  { %1330 = vmatpush.msrb.mxu0 %v1291_v45  ;;  %v1552_v45 = vld [vmem:[#allocation13 + $0x328] sm:$0xff] }
 0x505   :  { %1897 = vmatmul.msk.f32.vlgmr.msra.gmra.mxu0 %vm1072_vm6, %v1895_v46  ;;  %1423 = vmatpush.msra.mxu2 %v1378_v50  ;;  %v1655_v46 = vld [vmem:[%s2915_s13 + $0xf8] sm:$0x3]  ;;  %v1638_v50 = vld [vmem:[%s2915_s13 + $0x70] sm:$0xff] }
 0x506   :  { %1331 = vmatpush.msrb.mxu0 %v1289_v47  ;;  %1515 = vmatpush.msrb.mxu3 %v1467_v23  ;;  %v1654_v47 = vld [vmem:[%s2915_s13 + $0xf0] sm:$0xff]  ;;  %v1719_v23 = vld [vmem:[%s2917_s15 + $0x58] sm:$0xff] }
 0x507   :  { %1424 = vmatpush.msra.mxu2 %v1376_v53  ;;  %v1651_v53 = vld [vmem:[%s2915_s13 + $0xd8] sm:$0xff] }
 0x508   :  { %1332 = vmatpush.msrb.mxu0 %v1287_v48  ;;  %1516 = vmatpush.msrb.mxu3 %v1465_v27  ;;  %v1639_v48 = vld [vmem:[%s2915_s13 + $0x78] sm:$0xff] }
 0x509   :  { %1425 = vmatpush.msra.mxu2 %v1374_v56  ;;  %v1650_v56 = vld [vmem:[%s2915_s13 + $0xd0] sm:$0xff] }
 0x50a   :  { %1333 = vmatpush.msrb.mxu0 %v1285_v51  ;;  %1517 = vmatpush.msrb.mxu3 %v1463_v31  ;;  %v1652_v51 = vld [vmem:[%s2915_s13 + $0xe0] sm:$0xff]  ;;  %v1714_v31 = vld [vmem:[%s2917_s15 + $0x30] sm:$0xff] }
 0x50b   :  { %1426 = vmatpush.msra.mxu2 %v1372_v61  ;;  %v1634_v61 = vld [vmem:[%s2915_s13 + $0x50] sm:$0xff] }
 0x50c   :  { %1334 = vmatpush.msrb.mxu0 %v1283_v54  ;;  %1518 = vmatpush.msrb.mxu3 %v1461_v35  ;;  %v1636_v54 = vld [vmem:[%s2915_s13 + $0x60] sm:$0xff] }
 0x50d   :  { %1427 = vmatpush.msra.mxu2 %v1370_v0  ;;  %v1616_v35 = vld [vmem:[%s2914_s12] sm:$0x3] }
 0x50e   :  { %1335 = vmatpush.msrb.mxu0 %v1281_v57  ;;  %v1635_v57 = vld [vmem:[%s2915_s13 + $0x58] sm:$0xff] }
 0x50f   :  { %1580 = vmatpush.msrb.mxu2 %v1569_v7  ;;  %v1645_v7 = vld [vmem:[%s2915_s13 + $0xa8] sm:$0xff] }
 0x510   :  { %1336 = vmatpush.msrb.mxu0 %v1279_v62  ;;  %v1648_v62 = vld [vmem:[%s2915_s13 + $0xc0] sm:$0xff] }
 0x511   :  { %1581 = vmatpush.msrb.mxu2 %v1567_v22  ;;  %v1721_v22 = vld [vmem:[%s2917_s15 + $0x68] sm:$0xff] }
 0x512   :  { %1489 = vmatpush.msra.mxu0 %v1478_v1 }
 0x513   :  { %1582 = vmatpush.msrb.mxu2 %v1565_v24  ;;  %v1718_v24 = vld [vmem:[%s2917_s15 + $0x50] sm:$0xff] }
 0x514   :  { %1490 = vmatpush.msra.mxu0 %v1476_v3 }
 0x515   :  { %1583 = vmatpush.msrb.mxu2 %v1563_v28  ;;  %v1715_v28 = vld [vmem:[%s2917_s15 + $0x38] sm:$0xff] }
 0x516   :  { %1491 = vmatpush.msra.mxu0 %v1474_v5  ;;  %v1646_v5 = vld [vmem:[%s2915_s13 + $0xb0] sm:$0xff] }
 0x517   :  { %1584 = vmatpush.msrb.mxu2 %v1561_v32 }
 0x518   :  { %1492 = vmatpush.msra.mxu0 %v1472_v8  ;;  %v1631_v8 = vld [vmem:[%s2915_s13 + $0x38] sm:$0xff] }
 0x519   :  { %1585 = vmatpush.msrb.mxu2 %v1559_v36 }
 0x51a   :  { %1493 = vmatpush.msra.mxu0 %v1470_v10  ;;  %v1630_v10 = vld [vmem:[%s2915_s13 + $0x30] sm:$0xff] }
 0x51b   :  { %1586 = vmatpush.msrb.mxu2 %v1557_v38 }
 0x51c   :  { %1494 = vmatpush.msra.mxu0 %v1468_v20  ;;  %v1624_v20 = vld [vmem:[%s2915_s13] sm:$0xff] }
 0x51d   :  { %1587 = vmatpush.msrb.mxu2 %v1555_v40  ;;  %v1619_v40 = vperm.slane %v1616_v35, 1 }
 0x51f   :  { %1588 = vmatpush.msrb.mxu2 %v1553_v42 }
 0x521   :  { %1589 = vmatpush.msrb.mxu2 %v1551_v44 }
 0x57a   :  { %v1186_v12 = vpop.f32.mrf.mxu0  ;;  %v1229_v13 = vpop.f32.mrf.mxu2 }
 0x57b   :  { %v2727_v14 = vadd.f32 %v1229_v13, %v1186_v12  ;;  %v2771_v55 = vpop.f32.mrf.mxu1  ;;  %v1629_v12 = vld [vmem:[%s2915_s13 + $0x28] sm:$0xff]  ;;  %v1642_v13 = vld [vmem:[%s2915_s13 + $0x90] sm:$0xff] }
 0x582   :  { %v1274_v15 = vpop.f32.mrf.mxu0  ;;  %v1365_v16 = vpop.f32.mrf.mxu2 }
 0x583   :  { %1898 = vmatmul.msk.f32.vlgmr.msrb.gmra.mxu1 %vm677_vm3, %v1274_v15  ;;  %1899 = vmatmul.msk.f32.vlgmr.msrb.gmra.mxu0 %vm677_vm3, %v1274_v15  ;;  %v1641_v15 = vld [vmem:[%s2915_s13 + $0x88] sm:$0xff] }
 0x584   :  { %1903 = vmatmul.msk.f32.vlgmr.msra.gmra.mxu3 %vm677_vm3, %v1365_v16  ;;  %1904 = vmatmul.msk.f32.vlgmr.msra.gmra.mxu2 %vm677_vm3, %v1365_v16  ;;  %v1627_v16 = vld [vmem:[%s2915_s13 + $0x18] sm:$0xff] }
 0x585   :  { %1911 = vmatpush.msk.msrb.mxu1 %vm1076_vm5, %v2688_v59  ;;  %v1568_v59 = vld [vmem:[#allocation13 + $0x3a8] sm:$0xff]  ;;  %1915 = vmatpush.msk.msra.mxu3 %vm1664_vm7, %v1655_v46 }
 0x586   :  { %1732 = vmatpush.msra.mxu2 %v1722_v21 }
 0x587   :  { %1545 = vmatpush.msrb.mxu1 %v2690_v60  ;;  %v1466_v60 = vld [vmem:[#allocation13 + $0x2b0] sm:$0xff]  ;;  %1689 = vmatpush.msra.mxu3 %v1654_v47 }
 0x588   :  { %1495 = vmatpush.msra.mxu0 %v1466_v60  ;;  %v1249_v60 = vpop.f32.mrf.mxu3  ;;  %1733 = vmatpush.msra.mxu2 %v1721_v22 }
 0x589   :  { %1690 = vmatpush.msra.mxu3 %v1653_v49 }
 0x58a   :  { %1496 = vmatpush.msra.mxu0 %v1464_v26  ;;  %v1716_v26 = vld [vmem:[%s2917_s15 + $0x40] sm:$0xff] }
 0x58b   :  { %1907 = vmatmul.msk.f32.vlgmr.msra.gmra.mxu1 %vm1072_vm6, %v1905_v17  ;;  %1691 = vmatpush.msra.mxu3 %v1652_v51  ;;  %v1640_v17 = vld [vmem:[%s2915_s13 + $0x80] sm:$0xff] }
 0x58c   :  { %1600 = vmatpush.msra.mxu1 %v1570_v18  ;;  %1497 = vmatpush.msra.mxu0 %v1462_v30  ;;  %v1626_v18 = vld [vmem:[%s2915_s13 + $0x10] sm:$0xff]  ;;  %v1250_v30 = vadd.f32 %v1249_v60, %v2771_v55  ;;  %v1935_v55 = vld [vmem:[#allocation14] ss:$0 sm:$0xff] }
 0x58d   :  { %1692 = vmatpush.msra.mxu3 %v1651_v53  ;;  %v1709_v53 = vld [vmem:[%s2917_s15 + $0x8] sm:$0xff] }
 0x58e   :  { %1601 = vmatpush.msra.mxu1 %v1568_v59  ;;  %1498 = vmatpush.msra.mxu0 %v1460_v34  ;;  %v1720_v59 = vld [vmem:[%s2917_s15 + $0x60] sm:$0xff]  ;;  %v1713_v34 = vld [vmem:[%s2917_s15 + $0x28] sm:$0xff] }
 0x58f   :  { %1693 = vmatpush.msra.mxu3 %v1650_v56  ;;  %1734 = vmatpush.msra.mxu2 %v1720_v59 }
 0x590   :  { %1602 = vmatpush.msra.mxu1 %v1566_v25  ;;  %1668 = vmatpush.msrb.mxu0 %v1639_v48  ;;  %v1717_v25 = vld [vmem:[%s2917_s15 + $0x48] sm:$0xff]  ;;  %v1618_v48 = vperm.slane %v1616_v35, 0 }
 0x591   :  { %1694 = vmatpush.msra.mxu3 %v1649_v58  ;;  %1735 = vmatpush.msra.mxu2 %v1719_v23 }
 0x592   :  { %1603 = vmatpush.msra.mxu1 %v1564_v29  ;;  %1669 = vmatpush.msrb.mxu0 %v1638_v50 }
 0x593   :  { %1912 = vmatmul.msk.f32.vlgmr.msrb.gmra.mxu1 %vm1072_vm6, %v1910_v19  ;;  %1695 = vmatpush.msra.mxu3 %v1648_v62  ;;  %v1625_v19 = vld [vmem:[%s2915_s13 + $0x8] sm:$0xff]  ;;  %v1936_v62 = vld [vmem:[#allocation16] ss:$0 sm:$0xff] }
 0x594   :  { %1604 = vmatpush.msra.mxu1 %v1562_v33  ;;  %1670 = vmatpush.msrb.mxu0 %v1637_v52  ;;  %v1710_v52 = vld [vmem:[%s2917_s15 + $0x10] sm:$0xff] }
 0x595   :  { %1696 = vmatpush.msra.mxu3 %v1647_v63  ;;  %1736 = vmatpush.msra.mxu2 %v1718_v24 }
 0x596   :  { %1605 = vmatpush.msra.mxu1 %v1560_v37  ;;  %1671 = vmatpush.msrb.mxu0 %v1636_v54  ;;  %v1712_v37 = vld [vmem:[%s2917_s15 + $0x20] sm:$0xff] }
 0x597   :  { %1697 = vmatpush.msra.mxu3 %v1646_v5  ;;  %1737 = vmatpush.msra.mxu2 %v1717_v25  ;;  %v1708_v54 = vld [vmem:[%s2917_s15] sm:$0xff] }
 0x598   :  { %1606 = vmatpush.msra.mxu1 %v1558_v39  ;;  %1672 = vmatpush.msrb.mxu0 %v1635_v57 }
 0x599   :  { %1698 = vmatpush.msra.mxu3 %v1645_v7  ;;  %1738 = vmatpush.msra.mxu2 %v1716_v26 }
 0x59a   :  { %1607 = vmatpush.msra.mxu1 %v1556_v41  ;;  %1673 = vmatpush.msrb.mxu0 %v1634_v61  ;;  %v1711_v41 = vld [vmem:[%s2917_s15 + $0x18] sm:$0xff] }
 0x59b   :  { %1699 = vmatpush.msra.mxu3 %v1644_v9  ;;  %1739 = vmatpush.msra.mxu2 %v1715_v28 }
 0x59c   :  { %1608 = vmatpush.msra.mxu1 %v1554_v43  ;;  %1674 = vmatpush.msrb.mxu0 %v1633_v4 }
 0x59d   :  { %1700 = vmatpush.msra.mxu3 %v1643_v11  ;;  %1740 = vmatpush.msra.mxu2 %v1714_v31 }
 0x59e   :  { %1609 = vmatpush.msra.mxu1 %v1552_v45  ;;  %1675 = vmatpush.msrb.mxu0 %v1632_v6 }
 0x59f   :  { %1701 = vmatpush.msra.mxu3 %v1642_v13  ;;  %1741 = vmatpush.msra.mxu2 %v1713_v34 }
 0x5a0   :  { %1676 = vmatpush.msrb.mxu0 %v1631_v8 }
 0x5a1   :  { %1702 = vmatpush.msra.mxu3 %v1641_v15  ;;  %1742 = vmatpush.msra.mxu2 %v1712_v37 }
 0x5a2   :  { %1677 = vmatpush.msrb.mxu0 %v1630_v10 }
 0x5a3   :  { %1703 = vmatpush.msra.mxu3 %v1640_v17  ;;  %1743 = vmatpush.msra.mxu2 %v1711_v41 }
 0x5a4   :  { %1678 = vmatpush.msrb.mxu0 %v1629_v12 }
 0x5a5   :  { %1744 = vmatpush.msra.mxu2 %v1710_v52 }
 0x5a7   :  { %1745 = vmatpush.msra.mxu2 %v1709_v53 }
 0x5a9   :  { %1746 = vmatpush.msra.mxu2 %v1708_v54 }
 0x600   :  { %v1318_v0 = vpop.f32.mrf.mxu1  ;;  %v1338_v29 = vpop.f32.mrf.mxu0 }
 0x601   :  { %v2792_v1 = vadd.f32 %v1318_v0, %v2727_v14  ;;  %v1628_v14 = vld [vmem:[%s2915_s13 + $0x20] sm:$0xff]  ;;  %v1342_v33 = vadd.f32 %v1338_v29, %v1250_v30 }
 0x602   :  { %1679 = vmatpush.msrb.mxu0 %v1628_v14 }
 0x604   :  { %1680 = vmatpush.msrb.mxu0 %v1627_v16 }
 0x606   :  { %1681 = vmatpush.msrb.mxu0 %v1626_v18 }
 0x607   :  { %v1409_v27 = vpop.f32.mrf.mxu3  ;;  %v1429_v32 = vpop.f32.mrf.mxu2 }
 0x608   :  { %v1456_v2 = vpop.f32.mrf.mxu1  ;;  %1682 = vmatpush.msrb.mxu0 %v1625_v19  ;;  %v1433_v36 = vadd.f32 %v1429_v32, %v1342_v33  ;;  %v1432_v45 = vadd.f32 %v1409_v27, %v2792_v1 }
 0x609   :  { %1908 = vmatmul.msk.f32.vlgmr.msra.gmra.mxu0 %vm677_vm3, %v1456_v2  ;;  %1909 = vmatmul.msk.f32.vlgmr.msrb.gmra.mxu3 %vm677_vm3, %v1456_v2 }
 0x60a   :  { %1683 = vmatpush.msrb.mxu0 %v1624_v20 }
 0x610   :  { %v1547_v3 = vpop.f32.mrf.mxu1 }
 0x611   :  { %1913 = vmatmul.msk.f32.vlgmr.msrb.gmra.mxu2 %vm677_vm3, %v1547_v3  ;;  %1914 = vmatmul.msk.f32.vlgmr.msra.gmra.mxu1 %vm677_vm3, %v1547_v3 }
 0x686   :  { %v1500_v44 = vpop.f32.mrf.mxu0 }
 0x687   :  { %v1523_v47 = vadd.f32 %v1500_v44, %v1432_v45 }
 0x68c   :  { %v1520_v38 = vpop.f32.mrf.mxu3 }
 0x68d   :  { %v1524_v39 = vadd.f32 %v1520_v38, %v1433_v36 }
 0x68e   :  { %v1611_v42 = vpop.f32.mrf.mxu1 }
 0x68f   :  { %v1615_v43 = vadd.f32 %v1611_v42, %v1524_v39 }
 0x691   :  { %v1623_v46 = vadd.f32 %v1619_v40, %v1615_v43 }
 0x693   :  { %1916 = vmatmul.msk.f32.vlgmr.msra.gmra.mxu3 %vm1660_vm8, %v1623_v46 }
 0x694   :  { %v1591_v49 = vpop.f32.mrf.mxu2 }
 0x695   :  { %v1614_v50 = vadd.f32 %v1591_v49, %v1523_v47 }
 0x697   :  { %v1622_v51 = vadd.f32 %v1618_v48, %v1614_v50 }
 0x699   :  { %1684 = vmatmul.f32.vlgmr.msrb.gmra.mxu0 %v1622_v51 }
 0x716   :  { %v1685_v56 = vpop.f32.mrf.mxu0  ;;  %v1705_v58 = vpop.f32.mrf.mxu3 }
 0x717   :  { %v1686_v57 = vadd.f32 %v1935_v55, %v1685_v56 }
 0x719   :  { %v1706_v61 = vadd.f32 %v1705_v58, %v1686_v57 }
 0x71b   :  { %1917 = vmatmul.msk.f32.vlgmr.msra.gmra.mxu2 %vm1727_vm9, %v1706_v61 }
 0x79e   :  { %v1748_v63 = vpop.f32.mrf.mxu2 }
 0x79f   :  { %v1749_v0 = vadd.f32 %v1936_v62, %v1748_v63 }
 0x7a1   :  { %1752 = vst.msk [vmem:[#allocation17] sm:$0x3] %vm1751_vm10, %v1749_v0 }
 0x7a2   :  { %1763 = dma.vmem_to_hbm [thread:$0]  %s1759_s9, 32, %s1761_s20, [#allocation4]  }
 0x7a3   :  { %2187 = dma.done.wait [#allocation4], 32  }
 0x7a4   :  { %2188 = vsyncadd [#allocation4], 4294967264 }
 0x7a5   :  { %1768 = vsyncpa [#allocation3], 1 }
 0x7a6   :  { %1769 = vsyncpa [#allocation6], 1 }
 0x7a7   :  { %1770 = vsyncpa [#allocation9], 1 }
 0x7a8   :  { %1771 = vsyncpa [#allocation12], 1 }
 0x7a9   :  { %1772 = vsyncpa [#allocation15], 1 }
 0x7aa   :  { %1773 = vsyncpa [#allocation4], 1 }

</bundles_post_ra>
